<compile_context>
chip_gen: v5e
topology: v5e:2x2
jax: 0.10.0
libtpu: 0.0.40
codegen_flags: <defaults>
</compile_context>

<pallas_src>
import jax
import jax.numpy as jnp
import numpy as np
from jax.experimental import pallas as pl
from jax.experimental.pallas import tpu as pltpu


def _aggregation_kernel(w_ref, qx_ref, prev_ref, curr_ref, next_ref, o_ref):
    """One (batch, py-row-tile) grid step of the fused 5-tap aggregation.

    w_ref    : (5,)           SMEM  conv weights (up, right, center, down, left)
    qx_ref   : (1, HW)        VMEM  int32, qx (= q % w) of every flattened q
    prev_ref : (1, 1, W, HW)  VMEM  row max(py0-1, 0)       (top halo)
    curr_ref : (1, Tp, W, HW) VMEM  rows [py0, py0+Tp)
    next_ref : (1, 1, W, HW)  VMEM  row min(py0+Tp, H-1)    (bottom halo)
    o_ref    : (1, Tp, W, HW)
    """
    Tp = curr_ref.shape[1]
    W = curr_ref.shape[2]
    HW = curr_ref.shape[3]

    C = curr_ref[0]      # (Tp, W, HW)
    P = prev_ref[0]      # (1,  W, HW)
    Nx = next_ref[0]     # (1,  W, HW)

    w_up = w_ref[0]
    w_rt = w_ref[1]
    w_ct = w_ref[2]
    w_dn = w_ref[3]
    w_lf = w_ref[4]

    # qx index of every flattened q position, broadcast to block shape.
    qx = jnp.broadcast_to(qx_ref[...], (Tp, W, HW))
    is_qx_last = qx == (W - 1)
    is_qx_first = qx == 0

    # ---- up: corr[py-1, px, qy-1, qx] (clamped) ------------------------------
    up_rows = jnp.concatenate([P, C[:-1]], axis=0) if Tp > 1 else P
    up = jnp.concatenate([up_rows[..., :W], up_rows[..., :-W]], axis=-1)

    # ---- down: corr[py+1, px, qy+1, qx] (clamped) ----------------------------
    dn_rows = jnp.concatenate([C[1:], Nx], axis=0) if Tp > 1 else Nx
    dn = jnp.concatenate([dn_rows[..., W:], dn_rows[..., -W:]], axis=-1)

    # ---- right: corr[py, px+1, qy, qx+1] (clamped) ---------------------------
    rt_px = jnp.concatenate([C[:, 1:, :], C[:, -1:, :]], axis=1)
    rt_sh = jnp.concatenate([rt_px[..., 1:], rt_px[..., -1:]], axis=-1)
    rt = jnp.where(is_qx_last, rt_px, rt_sh)

    # ---- left: corr[py, px-1, qy, qx-1] (clamped) ----------------------------
    lf_px = jnp.concatenate([C[:, :1, :], C[:, :-1, :]], axis=1)
    lf_sh = jnp.concatenate([lf_px[..., :1], lf_px[..., :-1]], axis=-1)
    lf = jnp.where(is_qx_first, lf_px, lf_sh)

    acc = w_up * up + w_rt * rt + w_ct * C + w_dn * dn + w_lf * lf
    o_ref[0] = jnp.maximum(acc, 0.0).astype(o_ref.dtype)


def aggregation_forward(corr, conv_w, *, row_tile=None):
    """Pallas TPU forward of `aggregation`.

    corr   : (N, h*w, h, w) float32 correlation volume (the PyTorch module only
             supports N == 1; the kernel handles general N).
    conv_w : (5,) float32 Conv3d(5,1,1x1x1) weights in concat order
             (up, right, center, down, left).
    """
    N, Cc, H, W = corr.shape
    if Cc != H * W:
        raise ValueError("corr channel dim must equal h*w")
    HW = H * W

    if row_tile is None:
        row_tile = 8 if H % 8 == 0 else H
    if H % row_tile != 0:
        raise ValueError("row_tile must divide h")
    Tp = row_tile

    x = corr.reshape(N, H, W, HW)                              # free reshape
    qx_ids = (jnp.arange(HW, dtype=jnp.int32) % W).reshape(1, HW)
    wvec = conv_w.reshape(5).astype(jnp.float32)

    grid = (N, H // Tp)
    itemsize = jnp.dtype(corr.dtype).itemsize
    cost = pl.CostEstimate(
        flops=10 * N * HW * HW,
        transcendentals=0,
        bytes_accessed=int((2 + 2.0 / Tp) * N * HW * HW * itemsize),
    )

    out = pl.pallas_call(
        _aggregation_kernel,
        out_shape=jax.ShapeDtypeStruct((N, H, W, HW), corr.dtype),
        grid_spec=pltpu.PrefetchScalarGridSpec(
            num_scalar_prefetch=0,
            grid=grid,
            in_specs=[
                # 5 conv weights -> SMEM scalars.
                pl.BlockSpec(memory_space=pltpu.MemorySpace.SMEM),
                # loop-invariant qx index row.
                pl.BlockSpec((1, HW), lambda n, i: (0, 0)),
                # top halo row (clamped at the image top).
                pl.BlockSpec((1, 1, W, HW),
                             lambda n, i: (n, jnp.maximum(i * Tp - 1, 0), 0, 0)),
                # the Tp-row tile itself.
                pl.BlockSpec((1, Tp, W, HW), lambda n, i: (n, i, 0, 0)),
                # bottom halo row (clamped at the image bottom).
                pl.BlockSpec((1, 1, W, HW),
                             lambda n, i: (n, jnp.minimum((i + 1) * Tp, H - 1), 0, 0)),
            ],
            out_specs=pl.BlockSpec((1, Tp, W, HW), lambda n, i: (n, i, 0, 0)),
        ),
        compiler_params=pltpu.CompilerParams(
            dimension_semantics=("parallel", "parallel"),
            vmem_limit_bytes=32 * 1024 * 1024,
        ),
        cost_estimate=cost,
    )(wvec, qx_ids, x, x, x)

    return out.reshape(N, HW, H, W)


# ------------------------- plain-JAX reference --------------------------------
def _take_clamped(a, axis, delta):
    n = a.shape[axis]
    idx = jnp.clip(jnp.arange(n) + delta, 0, n - 1)
    return jnp.take(a, idx, axis=axis)


def aggregation_reference(corr, conv_w):
    """Pure-JAX reference of the (intended) PyTorch forward."""
    N, Cc, H, W = corr.shape
    x = corr.reshape(N, H, W, H, W)          # [n, py, px, qy, qx]
    up = _take_clamped(_take_clamped(x, 1, -1), 3, -1)
    rt = _take_clamped(_take_clamped(x, 2, +1), 4, +1)
    dn = _take_clamped(_take_clamped(x, 1, +1), 3, +1)
    lf = _take_clamped(_take_clamped(x, 2, -1), 4, -1)
    w = conv_w.reshape(5)
    y = w[0] * up + w[1] * rt + w[2] * x + w[3] * dn + w[4] * lf
    return jnp.maximum(y, 0.0).reshape(N, H * W, H, W)


if __name__ == "__main__":
    # The PyTorch module's shiftVol hard-codes batch == 1 and assumes a square
    # correlation volume with c == h * w.
    N, H, W = 1, 16, 16

    key = jax.random.PRNGKey(0)
    k_corr, k_w = jax.random.split(key)
    corr = jax.random.normal(k_corr, (N, H * W, H, W), dtype=jnp.float32)
    # Conv3d(5, 1, kernel_size=(1,1,1), bias=False) weights, concat order
    # (up, right, center, down, left).
    conv_w = 0.15 * jax.random.normal(k_w, (5,), dtype=jnp.float32) + 0.2

    run = jax.jit(aggregation_forward)
    out = jax.block_until_ready(run(corr, conv_w))

    ref = aggregation_reference(corr, conv_w)
    np.testing.assert_allclose(np.asarray(out), np.asarray(ref),
                               rtol=1e-5, atol=1e-5)
    assert out.shape == (N, H * W, H, W)
    print("KERNEL_OK")
</pallas_src>

<mosaic_0001>
module attributes {stable_mosaic.version = 11 : i64} {
  func.func @_aggregation_kernel(%arg0: i32, %arg1: i32, %arg2: memref<5xf32, #tpu.memory_space<smem>>, %arg3: memref<1x256xi32, #tpu.memory_space<vmem>>, %arg4: memref<1x1x16x256xf32, #tpu.memory_space<vmem>>, %arg5: memref<1x8x16x256xf32, #tpu.memory_space<vmem>>, %arg6: memref<1x1x16x256xf32, #tpu.memory_space<vmem>>, %arg7: memref<1x8x16x256xf32, #tpu.memory_space<vmem>>) attributes {dimension_semantics = [#tpu.dimension_semantics<parallel>, #tpu.dimension_semantics<parallel>], iteration_bounds = array<i64: 1, 2>, scalar_prefetch = 0 : i64, scratch_operands = 0 : i64, tpu.core_type = #tpu.core_type<tc>, window_params = [{transform_indices = @transform_0, window_bounds = array<i64: 5>}, {pipeline_mode = #tpu.pipeline_mode<synchronous>, transform_indices = @transform_1, window_bounds = array<i64: 1, 256>}, {transform_indices = @transform_2, window_bounds = array<i64: 1, 1, 16, 256>}, {transform_indices = @transform_3, window_bounds = array<i64: 1, 8, 16, 256>}, {transform_indices = @transform_4, window_bounds = array<i64: 1, 1, 16, 256>}, {transform_indices = @transform_5, window_bounds = array<i64: 1, 8, 16, 256>}]} {
    %c0 = arith.constant 0 : index
    %c0_0 = arith.constant 0 : index
    %c0_1 = arith.constant 0 : index
    %c0_2 = arith.constant 0 : index
    %0 = vector.load %arg5[%c0, %c0_0, %c0_1, %c0_2] : memref<1x8x16x256xf32, #tpu.memory_space<vmem>>, vector<1x8x16x256xf32>
    %1 = vector.shape_cast %0 : vector<1x8x16x256xf32> to vector<8x16x256xf32>
    %c0_3 = arith.constant 0 : index
    %c0_4 = arith.constant 0 : index
    %c0_5 = arith.constant 0 : index
    %c0_6 = arith.constant 0 : index
    %2 = vector.load %arg4[%c0_3, %c0_4, %c0_5, %c0_6] : memref<1x1x16x256xf32, #tpu.memory_space<vmem>>, vector<1x1x16x256xf32>
    %3 = vector.shape_cast %2 : vector<1x1x16x256xf32> to vector<1x16x256xf32>
    %c0_7 = arith.constant 0 : index
    %c0_8 = arith.constant 0 : index
    %c0_9 = arith.constant 0 : index
    %c0_10 = arith.constant 0 : index
    %4 = vector.load %arg6[%c0_7, %c0_8, %c0_9, %c0_10] : memref<1x1x16x256xf32, #tpu.memory_space<vmem>>, vector<1x1x16x256xf32>
    %5 = vector.shape_cast %4 : vector<1x1x16x256xf32> to vector<1x16x256xf32>
    %c0_11 = arith.constant 0 : index
    %6 = memref.load %arg2[%c0_11] : memref<5xf32, #tpu.memory_space<smem>>
    %c1 = arith.constant 1 : index
    %7 = memref.load %arg2[%c1] : memref<5xf32, #tpu.memory_space<smem>>
    %c2 = arith.constant 2 : index
    %8 = memref.load %arg2[%c2] : memref<5xf32, #tpu.memory_space<smem>>
    %c3 = arith.constant 3 : index
    %9 = memref.load %arg2[%c3] : memref<5xf32, #tpu.memory_space<smem>>
    %c4 = arith.constant 4 : index
    %10 = memref.load %arg2[%c4] : memref<5xf32, #tpu.memory_space<smem>>
    %c0_12 = arith.constant 0 : index
    %c0_13 = arith.constant 0 : index
    %11 = vector.load %arg3[%c0_12, %c0_13] : memref<1x256xi32, #tpu.memory_space<vmem>>, vector<1x256xi32>
    %12 = vector.shape_cast %11 : vector<1x256xi32> to vector<1x1x256xi32>
    %13 = vector.broadcast %12 : vector<1x1x256xi32> to vector<8x16x256xi32>
    %c15_i32 = arith.constant 15 : i32
    %14 = vector.broadcast %c15_i32 : i32 to vector<8x16x256xi32>
    %15 = arith.cmpi eq, %13, %14 : vector<8x16x256xi32>
    %c0_i32 = arith.constant 0 : i32
    %16 = vector.broadcast %c0_i32 : i32 to vector<8x16x256xi32>
    %17 = arith.cmpi eq, %13, %16 : vector<8x16x256xi32>
    %18 = vector.extract_strided_slice %1 {offsets = [0, 0, 0], sizes = [7, 16, 256], strides = [1, 1, 1]} : vector<8x16x256xf32> to vector<7x16x256xf32>
    %19 = tpu.concatenate %3, %18 in 0 : vector<1x16x256xf32>, vector<7x16x256xf32> -> vector<8x16x256xf32>
    %20 = vector.extract_strided_slice %19 {offsets = [0, 0, 0], sizes = [8, 16, 16], strides = [1, 1, 1]} : vector<8x16x256xf32> to vector<8x16x16xf32>
    %21 = vector.extract_strided_slice %19 {offsets = [0, 0, 0], sizes = [8, 16, 240], strides = [1, 1, 1]} : vector<8x16x256xf32> to vector<8x16x240xf32>
    %22 = tpu.concatenate %20, %21 in 2 : vector<8x16x16xf32>, vector<8x16x240xf32> -> vector<8x16x256xf32>
    %23 = vector.extract_strided_slice %1 {offsets = [1, 0, 0], sizes = [7, 16, 256], strides = [1, 1, 1]} : vector<8x16x256xf32> to vector<7x16x256xf32>
    %24 = tpu.concatenate %23, %5 in 0 : vector<7x16x256xf32>, vector<1x16x256xf32> -> vector<8x16x256xf32>
    %25 = vector.extract_strided_slice %24 {offsets = [0, 0, 16], sizes = [8, 16, 240], strides = [1, 1, 1]} : vector<8x16x256xf32> to vector<8x16x240xf32>
    %26 = vector.extract_strided_slice %24 {offsets = [0, 0, 240], sizes = [8, 16, 16], strides = [1, 1, 1]} : vector<8x16x256xf32> to vector<8x16x16xf32>
    %27 = tpu.concatenate %25, %26 in 2 : vector<8x16x240xf32>, vector<8x16x16xf32> -> vector<8x16x256xf32>
    %28 = vector.extract_strided_slice %1 {offsets = [0, 1, 0], sizes = [8, 15, 256], strides = [1, 1, 1]} : vector<8x16x256xf32> to vector<8x15x256xf32>
    %29 = vector.extract_strided_slice %1 {offsets = [0, 15, 0], sizes = [8, 1, 256], strides = [1, 1, 1]} : vector<8x16x256xf32> to vector<8x1x256xf32>
    %30 = tpu.concatenate %28, %29 in 1 : vector<8x15x256xf32>, vector<8x1x256xf32> -> vector<8x16x256xf32>
    %31 = vector.extract_strided_slice %30 {offsets = [0, 0, 1], sizes = [8, 16, 255], strides = [1, 1, 1]} : vector<8x16x256xf32> to vector<8x16x255xf32>
    %32 = vector.extract_strided_slice %30 {offsets = [0, 0, 255], sizes = [8, 16, 1], strides = [1, 1, 1]} : vector<8x16x256xf32> to vector<8x16x1xf32>
    %33 = tpu.concatenate %31, %32 in 2 : vector<8x16x255xf32>, vector<8x16x1xf32> -> vector<8x16x256xf32>
    %34 = arith.select %15, %30, %33 : vector<8x16x256xi1>, vector<8x16x256xf32>
    %35 = vector.extract_strided_slice %1 {offsets = [0, 0, 0], sizes = [8, 1, 256], strides = [1, 1, 1]} : vector<8x16x256xf32> to vector<8x1x256xf32>
    %36 = vector.extract_strided_slice %1 {offsets = [0, 0, 0], sizes = [8, 15, 256], strides = [1, 1, 1]} : vector<8x16x256xf32> to vector<8x15x256xf32>
    %37 = tpu.concatenate %35, %36 in 1 : vector<8x1x256xf32>, vector<8x15x256xf32> -> vector<8x16x256xf32>
    %38 = vector.extract_strided_slice %37 {offsets = [0, 0, 0], sizes = [8, 16, 1], strides = [1, 1, 1]} : vector<8x16x256xf32> to vector<8x16x1xf32>
    %39 = vector.extract_strided_slice %37 {offsets = [0, 0, 0], sizes = [8, 16, 255], strides = [1, 1, 1]} : vector<8x16x256xf32> to vector<8x16x255xf32>
    %40 = tpu.concatenate %38, %39 in 2 : vector<8x16x1xf32>, vector<8x16x255xf32> -> vector<8x16x256xf32>
    %41 = arith.select %17, %37, %40 : vector<8x16x256xi1>, vector<8x16x256xf32>
    %42 = vector.broadcast %6 : f32 to vector<8x16x256xf32>
    %43 = arith.mulf %42, %22 : vector<8x16x256xf32>
    %44 = vector.broadcast %7 : f32 to vector<8x16x256xf32>
    %45 = arith.mulf %44, %34 : vector<8x16x256xf32>
    %46 = arith.addf %43, %45 : vector<8x16x256xf32>
    %47 = vector.broadcast %8 : f32 to vector<8x16x256xf32>
    %48 = arith.mulf %47, %1 : vector<8x16x256xf32>
    %49 = arith.addf %46, %48 : vector<8x16x256xf32>
    %50 = vector.broadcast %9 : f32 to vector<8x16x256xf32>
    %51 = arith.mulf %50, %27 : vector<8x16x256xf32>
    %52 = arith.addf %49, %51 : vector<8x16x256xf32>
    %53 = vector.broadcast %10 : f32 to vector<8x16x256xf32>
    %54 = arith.mulf %53, %41 : vector<8x16x256xf32>
    %55 = arith.addf %52, %54 : vector<8x16x256xf32>
    %cst = arith.constant 0.000000e+00 : f32
    %56 = vector.broadcast %cst : f32 to vector<8x16x256xf32>
    %57 = arith.maximumf %55, %56 : vector<8x16x256xf32>
    %c0_14 = arith.constant 0 : index
    %c0_15 = arith.constant 0 : index
    %c0_16 = arith.constant 0 : index
    %c0_17 = arith.constant 0 : index
    %58 = vector.load %arg7[%c0_14, %c0_15, %c0_16, %c0_17] : memref<1x8x16x256xf32, #tpu.memory_space<vmem>>, vector<1x8x16x256xf32>
    %59 = vector.shape_cast %58 : vector<1x8x16x256xf32> to vector<8x16x256xf32>
    %60 = vector.shape_cast %57 : vector<8x16x256xf32> to vector<1x8x16x256xf32>
    tpu.vector_store %arg7[%c0_14, %c0_15, %c0_16, %c0_17], %60 {strides = array<i32>} : memref<1x8x16x256xf32, #tpu.memory_space<vmem>>, vector<1x8x16x256xf32>,
    return
  }
  func.func @transform_0(%arg0: i32, %arg1: i32) -> i32 {
    %c0_i32 = arith.constant 0 : i32
    %c0_i32_0 = arith.constant 0 : i32
    return %c0_i32 : i32
  }
  func.func @transform_1(%arg0: i32, %arg1: i32) -> (i32, i32) {
    %c0_i32 = arith.constant 0 : i32
    %c0_i32_0 = arith.constant 0 : i32
    %c0_i32_1 = arith.constant 0 : i32
    return %c0_i32, %c0_i32_0 : i32, i32
  }
  func.func @transform_2(%arg0: i32, %arg1: i32) -> (i32, i32, i32, i32) {
    %c8_i32 = arith.constant 8 : i32
    %0 = arith.muli %arg1, %c8_i32 : i32
    %c1_i32 = arith.constant 1 : i32
    %1 = arith.subi %0, %c1_i32 : i32
    %c0_i32 = arith.constant 0 : i32
    %2 = arith.maxsi %1, %c0_i32 : i32
    %c0_i32_0 = arith.constant 0 : i32
    %c0_i32_1 = arith.constant 0 : i32
    %c0_i32_2 = arith.constant 0 : i32
    return %arg0, %2, %c0_i32_0, %c0_i32_1 : i32, i32, i32, i32
  }
  func.func @transform_3(%arg0: i32, %arg1: i32) -> (i32, i32, i32, i32) {
    %c0_i32 = arith.constant 0 : i32
    %c0_i32_0 = arith.constant 0 : i32
    %c0_i32_1 = arith.constant 0 : i32
    return %arg0, %arg1, %c0_i32, %c0_i32_0 : i32, i32, i32, i32
  }
  func.func @transform_4(%arg0: i32, %arg1: i32) -> (i32, i32, i32, i32) {
    %c1_i32 = arith.constant 1 : i32
    %0 = arith.addi %arg1, %c1_i32 : i32
    %c8_i32 = arith.constant 8 : i32
    %1 = arith.muli %0, %c8_i32 : i32
    %c15_i32 = arith.constant 15 : i32
    %2 = arith.minsi %1, %c15_i32 : i32
    %c0_i32 = arith.constant 0 : i32
    %c0_i32_0 = arith.constant 0 : i32
    %c0_i32_1 = arith.constant 0 : i32
    return %arg0, %2, %c0_i32, %c0_i32_0 : i32, i32, i32, i32
  }
  func.func @transform_5(%arg0: i32, %arg1: i32) -> (i32, i32, i32, i32) {
    %c0_i32 = arith.constant 0 : i32
    %c0_i32_0 = arith.constant 0 : i32
    %c0_i32_1 = arith.constant 0 : i32
    return %arg0, %arg1, %c0_i32, %c0_i32_0 : i32, i32, i32, i32
  }
}

</mosaic_0001>

<bundles_post_ra>
// kernel: aggregation_forward.1
= control target key start
LH: loop header
LB: loop body
LE: loop exit
PB: predicated region body
PF: predicated region fallthrough
CT: control target
= control target key end

     0   :  { %10 = vsyncpa [#allocation3], 0  ;;  %s2002_s18 = smov 0   ;;  %s2004_s19 = smov 0   ;;  %s3876_s0 = inlined_call_operand.vmem [shape: f32[5], index: 0, kind: input, shape index: {}]   ;;  %s3877_s1 = inlined_call_operand.vmem [shape: s32[1,256], index: 1, kind: input, shape index: {}]   ;;  %s3878_s2 = inlined_call_operand.vmem [shape: f32[1,16,16,256], index: 2, kind: input, shape index: {}, may-alias: {2,3,4}]   ;;  %s3879_s3 = inlined_call_operand.vmem [shape: f32[1,16,16,256], index: 3, kind: input, shape index: {}, may-alias: {2,3,4}]   ;;  %s3880_s4 = inlined_call_operand.vmem [shape: f32[1,16,16,256], index: 4, kind: input, shape index: {}, may-alias: {2,3,4}]   ;;  %s3881_s5 = inlined_call_operand.vmem [shape: f32[1,16,16,256], index: 5, kind: output, shape index: {}]  }
   0x1   :  { %s2006_s20 = smov 0  }
   0x2 LB: > { %s1812_s21 = sadd.s32 4294967295, %s1965_s20   ;;  %s25_s22 = sadd.s32 1, %s1961_s19  ;;  %s1965_s20 = sphi %s2006_s20, %s16_s20   ;;  %s1961_s19 = sphi %s2004_s19, %s4267_s19   ;;  %s1957_s18 = sphi %s2002_s18, %s4266_s18  }
   0x3   : > { %p26_p0 = scmp.ge.s32.totalorder %s25_s22, 2  ;;  %p1820_p1 = scmp.ge.s32.totalorder %s1965_s20, 1 }
   0x4   : > { %p203_p2 = scmp.lt.s32.totalorder %s1965_s20, 3  ;;  %p1872_p4 = scmp.eq.s32.totalorder %s1812_s21, 0 }
   0x5   : > { %s4269_s22 = smov (%p26_p0, %s25_s22), 0  ;;  %s215_s25 = sshll.u32 %s3876_s0, 4  ;;  %s216_s25 = int_to_ptr.vmem [resolvable:$true] %s215_s25 }
   0x6   : > { %p204_p3 = pnand %p1820_p1, %p203_p2  ;;  %s1967_s26 = smov [#allocation2]  }
   0x8   : > { %p1868_p5 = pneg %p204_p3  ;;  %285 = sbr.rel (%p204_p3) target bundleno = 488 (0x1e8), region = 40 }
   0xa   : > { %p1869_p6 = pnand %p1872_p4, %p1868_p5 }
   0xc   : > { %1871 = dma.vmem_to_smem (!%p1869_p6), %s216_s25, 16, %s1967_s26, [#allocation3]  }
   0xd   : > { %1952 = dma.done.wait (%p1872_p4), [#allocation3], 16  }
   0xe   : > { %1954 = vsyncadd (%p1872_p4), [#allocation3], 4294967280 }
   0xf   : > { %292 = sfence }
  0x10   : > { %s2024_s27 = sshll.u32 %s1957_s18, 3  ;;  %s1968_s9 = smov 16   ;;  %vm555_vm0 = vcmask 130048   ;;  %vm757_vm1 = vcmask 1046528   ;;  %vm692_vm2 = vcmask 916480   ;;  %vm1031_vm3 = vcmask 1040384  }
  0x11   : > { %p371_p7 = scmp.lt.s32.totalorder %s2024_s27, 15  ;;  %s1826_s28 = sadd.s32 4294967295, %s2024_s27  ;;  %vm934_vm4 = vcmask 1039360   ;;  %vm1208_vm7 = vcmask 7168  }
  0x12   : > { %p353_p8 = scmp.gt.s32.totalorder %s1826_s28, 0  ;;  %p1827_p9 = scmp.lt.s32.totalorder %s1826_s28, 15 }
  0x13   : > { %s2029_s29 = scalar_select %p371_p7, %s2024_s27, 15 }
  0x14   : > { %s4271_s28 = smov (!%p353_p8, %s1826_s28), 0  ;;  %s1969_s14 = smov 112  }
  0x15   : > { %s1859_s30 = sshll.u32 %s2029_s29, 5  ;;  %s4273_s28 = smov (!%p1827_p9, %s4271_s28), 15 }
  0x16   : > { %s2037_s8 = scalar_lea.vmem %s3879_s3, %s1859_s30  ;;  %s1858_s10 = sshll.u32 %s4273_s28, 5 }
  0x17   : > { %v2040_v0 = vld [vmem:[%s2037_s8] sm:$0xff]  ;;  %s363_s13 = scalar_lea.vmem %s3878_s2, %s1858_s10  ;;  %v2056_v3 = vld [vmem:[%s2037_s8 + $0x8] sm:$0xff]  ;;  %v2068_v7 = vld [vmem:[%s2037_s8 + $0x18] sm:$0xff]  ;;  %s1861_s15 = sadd.s32 8, %s2024_s27 }
  0x18   : > { %499 = vrot.lane.b32.xlu2 %v2040_v0, %s1968_s9  ;;  %v2047_v1 = vld [vmem:[%s363_s13 + $0x10] sm:$0xff]  ;;  %v2049_v2 = vld [vmem:[%s363_s13] sm:$0xff]  ;;  %v442_v4 = vld [vmem:[%s363_s13 + $0x18] sm:$0xff]  ;;  %p2263_p10 = scmp.lt.s32.totalorder %s1861_s15, 15  ;;  %s1970_s24 = smov 127  }
  0x19   : > { %495 = vrot.lane.b32.xlu1 %v2047_v1, %s1968_s9  ;;  %491 = vrot.lane.b32.xlu0 %v2049_v2, %s1968_s9  ;;  %v440_v5 = vld [vmem:[%s363_s13 + $0x8] sm:$0xff]  ;;  %v2063_v6 = vld [vmem:[%s2037_s8 + $0x20] sm:$0xff]  ;;  %s1847_s25 = sld [smem:[#allocation2 + $0x2]]  ;;  %s3493_s13 = scalar_lea.vmem %s3881_s5, %s1859_s30 }
  0x1a   : > { %v2071_v8 = vld [vmem:[%s2037_s8 + $0x10] sm:$0xff]  ;;  %v2078_v9 = vld [vmem:[%s2037_s8 + $0x38] sm:$0xff]  ;;  %v2086_v11 = vld [vmem:[%s2037_s8 + $0x28] sm:$0xff]  ;;  %s4275_s15 = smov (!%p2263_p10, %s1861_s15), 15  ;;  %s447_s26 = sld [smem:[#allocation2]] }
  0x1b   : > { %v2083_v10 = vld [vmem:[%s2037_s8 + $0x30] sm:$0xff]  ;;  %4006 = vst [vmem:[#allocation5_spill] sm:$0xff] %v2086_v11  ;;  %v2098_v13 = vld [vmem:[%s2037_s8 + $0x48] sm:$0xff]  ;;  %v2101_v14 = vld [vmem:[%s2037_s8 + $0x40] sm:$0xff]  ;;  %s4277_s15 = smov (!%p2263_p10, %s4275_s15), 15  ;;  %s1846_s27 = sld [smem:[#allocation2 + $0x1]] }
  0x1c   : > { %v2093_v12 = vld [vmem:[%s2037_s8 + $0x50] sm:$0xff]  ;;  %v2108_v15 = vld [vmem:[%s2037_s8 + $0x68] sm:$0xff]  ;;  %v2113_v16 = vld [vmem:[%s2037_s8 + $0x60] sm:$0xff]  ;;  %s1862_s17 = sshll.u32 %s4277_s15, 5  ;;  %s1848_s7 = sld [smem:[#allocation2 + $0x3]] }
  0x1d   : > { %v2116_v17 = vld [vmem:[%s2037_s8 + $0x58] sm:$0xff]  ;;  %v2123_v18 = vld [vmem:[%s2037_s8 + $0x80] sm:$0xff]  ;;  %v2131_v20 = vld [vmem:[%s2037_s8 + $0x70] sm:$0xff]  ;;  %s2316_s23 = scalar_lea.vmem %s3880_s4, %s1862_s17  ;;  %s3397_s10 = sld [smem:[#allocation2 + $0x4]] }
  0x1e   : > { %v2128_v19 = vld [vmem:[%s2037_s8 + $0x78] sm:$0xff]  ;;  %v2143_v22 = vld [vmem:[%s2037_s8 + $0x90] sm:$0xff]  ;;  %v2146_v23 = vld [vmem:[%s2037_s8 + $0x88] sm:$0xff] }
  0x1f   : > { %v2138_v21 = vld [vmem:[%s2037_s8 + $0x98] sm:$0xff]  ;;  %4008 = vst [vmem:[#allocation7_spill] sm:$0xff] %v2143_v22  ;;  %v2153_v24 = vld [vmem:[%s2037_s8 + $0xb0] sm:$0xff]  ;;  %v2158_v25 = vld [vmem:[%s2037_s8 + $0xa8] sm:$0xff] }
  0x20   : > { %501 = vrot.lane.b32.xlu2 %v2056_v3, %s1968_s9  ;;  %4007 = vst [vmem:[#allocation6_spill] sm:$0xff] %v2138_v21  ;;  %v2161_v26 = vld [vmem:[%s2037_s8 + $0xa0] sm:$0xff]  ;;  %v2168_v27 = vld [vmem:[%s2037_s8 + $0xc8] sm:$0xff]  ;;  %v2176_v29 = vld [vmem:[%s2037_s8 + $0xb8] sm:$0xff] }
  0x21   : > { %497 = vrot.lane.b32.xlu1 %v442_v4, %s1968_s9  ;;  %493 = vrot.lane.b32.xlu0 %v440_v5, %s1968_s9  ;;  %4009 = vst [vmem:[#allocation8_spill] sm:$0xff] %v2153_v24  ;;  %v2173_v28 = vld [vmem:[%s2037_s8 + $0xc0] sm:$0xff]  ;;  %v2185_v30 = vld [vmem:[%s2037_s8 + $0xd8] sm:$0xff] }
  0x22   : > { %4010 = vst [vmem:[#allocation9_spill] sm:$0xff] %v2158_v25  ;;  %v2188_v31 = vld [vmem:[%s2037_s8 + $0xd0] sm:$0xff]  ;;  %v2272_v49 = vld [vmem:[%s2037_s8 + $0xe0] sm:$0xff]  ;;  %v2295_v55 = vld [vmem:[%s2037_s8 + $0xf8] sm:$0xff] }
  0x23   : > { %4011 = vst [vmem:[#allocation10_spill] sm:$0xff] %v2168_v27  ;;  %v2306_v59 = vld [vmem:[%s2037_s8 + $0xf0] sm:$0xff]  ;;  %v2309_v60 = vld [vmem:[%s2037_s8 + $0xe8] sm:$0xff] }
  0x24   : > { %4012 = vst [vmem:[#allocation11_spill] sm:$0xff] %v2173_v28  ;;  %v445_v62 = vld [vmem:[%s2316_s23 + $0x10] sm:$0xff] }
  0x25   : > { %4013 = vst [vmem:[#allocation12_spill] sm:$0xff] %v2176_v29 }
  0x26   : > { %4014 = vst [vmem:[#allocation13_spill] sm:$0xff] %v2188_v31 }
  0x27   : > { %4018 = vst [vmem:[#allocation16_spill] sm:$0xff] %v2272_v49 }
  0x28   : > { %507 = vrot.lane.b32.xlu2 %v2063_v6, %s1968_s9  ;;  %4022 = vst [vmem:[#allocation20_spill] sm:$0xff] %v2295_v55 }
  0x29   : > { %505 = vrot.lane.b32.xlu1 %v2068_v7, %s1968_s9  ;;  %503 = vrot.lane.b32.xlu0 %v2071_v8, %s1968_s9  ;;  %4025 = vst [vmem:[#allocation23_spill] sm:$0xff] %v2306_v59 }
  0x2a   : > { %4026 = vst [vmem:[#allocation24_spill] sm:$0xff] %v2309_v60 }
  0x30   : > { %513 = vrot.lane.b32.xlu2 %v2078_v9, %s1968_s9 }
  0x31   : > { %511 = vrot.lane.b32.xlu1 %v2083_v10, %s1968_s9  ;;  %509 = vrot.lane.b32.xlu0 %v2086_v11, %s1968_s9 }
  0x38   : > { %519 = vrot.lane.b32.xlu2 %v2093_v12, %s1968_s9 }
  0x39   : > { %517 = vrot.lane.b32.xlu1 %v2098_v13, %s1968_s9  ;;  %515 = vrot.lane.b32.xlu0 %v2101_v14, %s1968_s9 }
  0x40   : > { %525 = vrot.lane.b32.xlu2 %v2108_v15, %s1968_s9 }
  0x41   : > { %523 = vrot.lane.b32.xlu1 %v2113_v16, %s1968_s9  ;;  %521 = vrot.lane.b32.xlu0 %v2116_v17, %s1968_s9 }
  0x48   : > { %531 = vrot.lane.b32.xlu2 %v2123_v18, %s1968_s9 }
  0x49   : > { %529 = vrot.lane.b32.xlu1 %v2128_v19, %s1968_s9  ;;  %527 = vrot.lane.b32.xlu0 %v2131_v20, %s1968_s9 }
  0x50   : > { %537 = vrot.lane.b32.xlu2 %v2138_v21, %s1968_s9 }
  0x51   : > { %535 = vrot.lane.b32.xlu1 %v2143_v22, %s1968_s9  ;;  %533 = vrot.lane.b32.xlu0 %v2146_v23, %s1968_s9 }
  0x58   : > { %543 = vrot.lane.b32.xlu2 %v2153_v24, %s1968_s9 }
  0x59   : > { %541 = vrot.lane.b32.xlu1 %v2158_v25, %s1968_s9  ;;  %539 = vrot.lane.b32.xlu0 %v2161_v26, %s1968_s9 }
  0x60   : > { %549 = vrot.lane.b32.xlu2 %v2168_v27, %s1968_s9 }
  0x61   : > { %547 = vrot.lane.b32.xlu1 %v2173_v28, %s1968_s9  ;;  %545 = vrot.lane.b32.xlu0 %v2176_v29, %s1968_s9 }
  0x68   : > { %628 = vrot.lane.b32.xlu2 %v2063_v6, %s1969_s14 }
  0x69   : > { %553 = vrot.lane.b32.xlu1 %v2185_v30, %s1968_s9  ;;  %551 = vrot.lane.b32.xlu0 %v2188_v31, %s1968_s9  ;;  %s1971_s9 = smov 1  }
  0x70   : > { %634 = vrot.lane.b32.xlu2 %v2078_v9, %s1969_s14 }
  0x71   : > { %632 = vrot.lane.b32.xlu1 %v2083_v10, %s1969_s14  ;;  %630 = vrot.lane.b32.xlu0 %v2086_v11, %s1969_s14 }
  0x72   : > { %v2196_v32 = vpop.permute.xlu2 %499 }
  0x78   : > { %640 = vrot.lane.b32.xlu2 %v2093_v12, %s1969_s14 }
  0x79   : > { %638 = vrot.lane.b32.xlu1 %v2098_v13, %s1969_s14  ;;  %636 = vrot.lane.b32.xlu0 %v2101_v14, %s1969_s14 }
  0x7a   : > { %v502_v33 = vpop.permute.xlu2 %501 }
  0x7b   : > { %v2206_v34 = vsel %vm555_vm0, %v2196_v32, %v502_v33 }
  0x80   : > { %646 = vrot.lane.b32.xlu2 %v2108_v15, %s1969_s14 }
  0x81   : > { %644 = vrot.lane.b32.xlu1 %v2113_v16, %s1969_s14  ;;  %642 = vrot.lane.b32.xlu0 %v2116_v17, %s1969_s14 }
  0x82   : > { %v2214_v35 = vpop.permute.xlu2 %507 }
  0x88   : > { %652 = vrot.lane.b32.xlu2 %v2123_v18, %s1969_s14 }
  0x89   : > { %650 = vrot.lane.b32.xlu1 %v2128_v19, %s1969_s14  ;;  %648 = vrot.lane.b32.xlu0 %v2131_v20, %s1969_s14 }
  0x8a   : > { %v514_v36 = vpop.permute.xlu2 %513 }
  0x8b   : > { %v2226_v37 = vpop.permute.xlu1 %495  ;;  %v2228_v38 = vpop.permute.xlu0 %491 }
  0x90   : > { %658 = vrot.lane.b32.xlu2 %v2138_v21, %s1969_s14 }
  0x91   : > { %656 = vrot.lane.b32.xlu1 %v2143_v22, %s1969_s14  ;;  %654 = vrot.lane.b32.xlu0 %v2146_v23, %s1969_s14 }
  0x92   : > { %v2232_v39 = vpop.permute.xlu2 %519 }
  0x93   : > { %v498_v40 = vpop.permute.xlu1 %497  ;;  %v494_v41 = vpop.permute.xlu0 %493 }
  0x94   : > { %v2240_v42 = vsel %vm555_vm0, %v2226_v37, %v498_v40  ;;  %v2244_v43 = vsel %vm555_vm0, %v2228_v38, %v494_v41  ;;  %v443_v40 = vld [vmem:[%s2316_s23] sm:$0xff]  ;;  %v761_v41 = vrot.slane %v2056_v3, 1 }
  0x95   : > { %4015 = vst [vmem:[#allocation14_spill] sm:$0xff] %v2240_v42  ;;  %v779_v42 = vrot.slane %v2108_v15, 1 }
  0x98   : > { %664 = vrot.lane.b32.xlu2 %v2153_v24, %s1969_s14 }
  0x99   : > { %662 = vrot.lane.b32.xlu1 %v2158_v25, %s1969_s14  ;;  %660 = vrot.lane.b32.xlu0 %v2161_v26, %s1969_s14 }
  0x9a   : > { %v526_v44 = vpop.permute.xlu2 %525 }
  0x9b   : > { %v506_v45 = vpop.permute.xlu1 %505  ;;  %v2252_v46 = vpop.permute.xlu0 %503 }
  0x9c   : > { %v2256_v47 = vsel %vm555_vm0, %v2252_v46, %v506_v45  ;;  %v762_v45 = vrot.slane %v2068_v7, 1 }
  0xa0   : > { %670 = vrot.lane.b32.xlu2 %v2168_v27, %s1969_s14 }
  0xa1   : > { %668 = vrot.lane.b32.xlu1 %v2173_v28, %s1969_s14  ;;  %666 = vrot.lane.b32.xlu0 %v2176_v29, %s1969_s14 }
  0xa2   : > { %v2261_v48 = vpop.permute.xlu2 %531 }
  0xa3   : > { %4016 = vst [vmem:[#allocation15_spill] sm:$0xff] %v2261_v48  ;;  %v2274_v50 = vpop.permute.xlu1 %511  ;;  %v510_v51 = vpop.permute.xlu0 %509 }
  0xa4   : > { %4019 = vst [vmem:[#allocation17_spill] sm:$0xff] %v2274_v50  ;;  %v2278_v52 = vsel %vm555_vm0, %v2274_v50, %v514_v36  ;;  %v2282_v53 = vsel %vm555_vm0, %v2214_v35, %v510_v51  ;;  %v444_v36 = vld [vmem:[%s2316_s23 + $0x8] sm:$0xff]  ;;  %v780_v50 = vrot.slane %v2128_v19, 1 }
  0xa5   : > { %4020 = vst [vmem:[#allocation18_spill] sm:$0xff] %v2278_v52 }
  0xa6   : > { %4021 = vst [vmem:[#allocation19_spill] sm:$0xff] %v2282_v53 }
  0xa8   : > { %676 = vrot.lane.b32.xlu2 %v2272_v49, %s1969_s14 }
  0xa9   : > { %674 = vrot.lane.b32.xlu1 %v2185_v30, %s1969_s14  ;;  %672 = vrot.lane.b32.xlu0 %v2188_v31, %s1969_s14 }
  0xaa   : > { %v538_v54 = vpop.permute.xlu2 %537 }
  0xab   : > { %v518_v56 = vpop.permute.xlu1 %517  ;;  %v2297_v57 = vpop.permute.xlu0 %515 }
  0xac   : > { %4023 = vst [vmem:[#allocation21_spill] sm:$0xff] %v2297_v57  ;;  %v2301_v58 = vsel %vm555_vm0, %v2297_v57, %v518_v56  ;;  %v758_v56 = vrot.slane %v2040_v0, 1 }
  0xad   : > { %4024 = vst [vmem:[#allocation22_spill] sm:$0xff] %v2301_v58  ;;  %v765_v58 = vrot.slane %v2083_v10, 1 }
  0xb0   : > { %682 = vrot.lane.b32.xlu2 %v2295_v55, %s1969_s14 }
  0xb1   : > { %680 = vrot.lane.b32.xlu1 %v2306_v59, %s1969_s14  ;;  %678 = vrot.lane.b32.xlu0 %v2309_v60, %s1969_s14 }
  0xb2   : > { %v2311_v61 = vpop.permute.xlu2 %543 }
  0xb3   : > { %4027 = vst [vmem:[#allocation25_spill] sm:$0xff] %v2311_v61  ;;  %v2323_v63 = vpop.permute.xlu1 %523  ;;  %v522_v4 = vpop.permute.xlu0 %521 }
  0xb4   : > { %4028 = vst [vmem:[#allocation26_spill] sm:$0xff] %v2323_v63  ;;  %v2327_v5 = vsel %vm555_vm0, %v2323_v63, %v526_v44  ;;  %v2331_v33 = vsel %vm555_vm0, %v2232_v39, %v522_v4  ;;  %v2341_v44 = vsel %vm757_vm1, %v761_v41, %v762_v45  ;;  %v764_v41 = vrot.slane %v2063_v6, 1 }
  0xb5   : > { %4029 = vst [vmem:[#allocation27_spill] sm:$0xff] %v2327_v5 }
  0xb6   : > { %4030 = vst [vmem:[#allocation28_spill] sm:$0xff] %v2331_v33 }
  0xb8   : > { %688 = vrot.lane.b32.xlu2 %v445_v62, %s1969_s14  ;;  %v759_v62 = vrot.slane %v2071_v8, 1 }
  0xb9   : > { %686 = vrot.lane.b32.xlu1 %v444_v36, %s1969_s14  ;;  %684 = vrot.lane.b32.xlu0 %v443_v40, %s1969_s14  ;;  %v2357_v40 = vld [vmem:[%s2316_s23 + $0x18] sm:$0xff] }
  0xba   : > { %v550_v51 = vpop.permute.xlu2 %549  ;;  %v2354_v36 = vsel %vm757_vm1, %v758_v56, %v759_v62  ;;  %4034 = vst [vmem:[#allocation32_spill] sm:$0xff] %v2357_v40 }
  0xbb   : > { %v530_v4 = vpop.permute.xlu1 %529  ;;  %v2345_v5 = vpop.permute.xlu0 %527  ;;  %4033 = vst [vmem:[#allocation31_spill] sm:$0xff] %v2354_v36 }
  0xbc   : > { %4031 = vst [vmem:[#allocation29_spill] sm:$0xff] %v2345_v5  ;;  %v2349_v33 = vsel %vm555_vm0, %v2345_v5, %v530_v4  ;;  %v2368_v4 = vsel %vm757_vm1, %v764_v41, %v765_v58  ;;  %v2388_v41 = vsel %vm757_vm1, %v759_v62, %v2071_v8 }
  0xbd   : > { %4032 = vst [vmem:[#allocation30_spill] sm:$0xff] %v2349_v33 }
  0xbe   : > { %4035 = vst [vmem:[#allocation33_spill] sm:$0xff] %v2368_v4 }
  0xbf   : > { %4040 = vst [vmem:[#allocation38_spill] sm:$0xff] %v2388_v41 }
  0xc0   : > { %872 = vrot.lane.b32.xlu2 %v2341_v44, %s1970_s24 }
  0xc1   : > { %870 = vrot.lane.b32.xlu1 %v2354_v36, %s1970_s24  ;;  %690 = vrot.lane.b32.xlu0 %v2357_v40, %s1969_s14  ;;  %v2384_v40 = vsel %vm757_vm1, %v762_v45, %v2068_v7  ;;  %v768_v36 = vrot.slane %v2078_v9, 1  ;;  %v767_v45 = vrot.slane %v2086_v11, 1 }
  0xc2   : > { %v2361_v63 = vpop.permute.xlu2 %628  ;;  %4039 = vst [vmem:[#allocation37_spill] sm:$0xff] %v2384_v40 }
  0xc3   : > { %v2370_v5 = vpop.permute.xlu1 %535  ;;  %v534_v56 = vpop.permute.xlu0 %533 }
  0xc4   : > { %4036 = vst [vmem:[#allocation34_spill] sm:$0xff] %v2370_v5  ;;  %v2374_v33 = vsel %vm555_vm0, %v2370_v5, %v538_v54  ;;  %v2378_v53 = vsel %vm555_vm0, %v2261_v48, %v534_v56  ;;  %v2399_v54 = vsel %vm757_vm1, %v768_v36, %v2078_v9  ;;  %v2415_v5 = vsel %vm757_vm1, %v767_v45, %v768_v36 }
  0xc5   : > { %4037 = vst [vmem:[#allocation35_spill] sm:$0xff] %v2374_v33  ;;  %v770_v36 = vrot.slane %v2101_v14, 1 }
  0xc6   : > { %4038 = vst [vmem:[#allocation36_spill] sm:$0xff] %v2378_v53  ;;  %v2412_v53 = vsel %vm757_vm1, %v765_v58, %v2083_v10  ;;  %v773_v58 = vrot.slane %v2098_v13, 1 }
  0xc7   : > { %4043 = vst [vmem:[#allocation41_spill] sm:$0xff] %v2412_v53 }
  0xc8   : > { %878 = vrot.lane.b32.xlu2 %v2368_v4, %s1970_s24  ;;  %4044 = vst [vmem:[#allocation42_spill] sm:$0xff] %v2415_v5  ;;  %v771_v4 = vrot.slane %v2093_v12, 1 }
  0xc9   : > { %876 = vrot.lane.b32.xlu1 %v2384_v40, %s1970_s24  ;;  %874 = vrot.lane.b32.xlu0 %v2388_v41, %s1970_s24 }
  0xca   : > { %v2391_v52 = vpop.permute.xlu2 %634  ;;  %v2447_v57 = vsel %vm757_vm1, %v770_v36, %v771_v4 }
  0xcb   : > { %v542_v56 = vpop.permute.xlu1 %541  ;;  %v2402_v33 = vpop.permute.xlu0 %539  ;;  %4050 = vst [vmem:[#allocation48_spill] sm:$0xff] %v2447_v57 }
  0xcc   : > { %4041 = vst [vmem:[#allocation39_spill] sm:$0xff] %v2402_v33  ;;  %v2406_v62 = vsel %vm555_vm0, %v2402_v33, %v542_v56  ;;  %v2426_v56 = vsel %vm757_vm1, %v771_v4, %v2093_v12  ;;  %v774_v33 = vrot.slane %v2116_v17, 1  ;;  %v777_v4 = vrot.slane %v2131_v20, 1 }
  0xcd   : > { %4042 = vst [vmem:[#allocation40_spill] sm:$0xff] %v2406_v62 }
  0xce   : > { %4045 = vst [vmem:[#allocation43_spill] sm:$0xff] %v2426_v56 }
  0xd0   : > { %884 = vrot.lane.b32.xlu2 %v2399_v54, %s1970_s24 }
  0xd1   : > { %882 = vrot.lane.b32.xlu1 %v2412_v53, %s1970_s24  ;;  %880 = vrot.lane.b32.xlu0 %v2415_v5, %s1970_s24  ;;  %v2444_v5 = vsel %vm757_vm1, %v773_v58, %v774_v33 }
  0xd2   : > { %v2418_v41 = vpop.permute.xlu2 %640  ;;  %4049 = vst [vmem:[#allocation47_spill] sm:$0xff] %v2444_v5 }
  0xd3   : > { %v2431_v45 = vpop.permute.xlu1 %547  ;;  %v546_v62 = vpop.permute.xlu0 %545 }
  0xd4   : > { %4046 = vst [vmem:[#allocation44_spill] sm:$0xff] %v2431_v45  ;;  %v2435_v40 = vsel %vm555_vm0, %v2431_v45, %v550_v51  ;;  %v2439_v53 = vsel %vm555_vm0, %v2311_v61, %v546_v62  ;;  %v2458_v51 = vsel %vm757_vm1, %v779_v42, %v780_v50  ;;  %v776_v62 = vrot.slane %v2113_v16, 1 }
  0xd5   : > { %4047 = vst [vmem:[#allocation45_spill] sm:$0xff] %v2435_v40  ;;  %v2475_v42 = vsel %vm757_vm1, %v774_v33, %v2116_v17  ;;  %v782_v45 = vrot.slane %v2123_v18, 1  ;;  %v783_v61 = vrot.slane %v2143_v22, 1 }
  0xd6   : > { %4048 = vst [vmem:[#allocation46_spill] sm:$0xff] %v2439_v53  ;;  %v2471_v53 = vsel %vm757_vm1, %v776_v62, %v777_v4 }
  0xd7   : > { %4053 = vst [vmem:[#allocation51_spill] sm:$0xff] %v2471_v53  ;;  %v2486_v62 = vsel %vm757_vm1, %v782_v45, %v783_v61  ;;  %v2507_v45 = vsel %vm757_vm1, %v777_v4, %v2131_v20 }
  0xd8   : > { %890 = vrot.lane.b32.xlu2 %v2426_v56, %s1970_s24  ;;  %4054 = vst [vmem:[#allocation52_spill] sm:$0xff] %v2475_v42 }
  0xd9   : > { %888 = vrot.lane.b32.xlu1 %v2444_v5, %s1970_s24  ;;  %886 = vrot.lane.b32.xlu0 %v2447_v57, %s1970_s24  ;;  %4055 = vst [vmem:[#allocation53_spill] sm:$0xff] %v2486_v62  ;;  %v789_v5 = vrot.slane %v2153_v24, 1 }
  0xda   : > { %v2451_v48 = vpop.permute.xlu2 %646  ;;  %4058 = vst [vmem:[#allocation56_spill] sm:$0xff] %v2507_v45 }
  0xdb   : > { %v554_v58 = vpop.permute.xlu1 %553  ;;  %v2462_v36 = vpop.permute.xlu0 %551 }
  0xdc   : > { %4051 = vst [vmem:[#allocation49_spill] sm:$0xff] %v2462_v36  ;;  %v2466_v40 = vsel %vm555_vm0, %v2462_v36, %v554_v58 }
  0xdd   : > { %4052 = vst [vmem:[#allocation50_spill] sm:$0xff] %v2466_v40 }
  0xe0   : > { %896 = vrot.lane.b32.xlu2 %v2458_v51, %s1970_s24 }
  0xe1   : > { %894 = vrot.lane.b32.xlu1 %v2471_v53, %s1970_s24  ;;  %892 = vrot.lane.b32.xlu0 %v2475_v42, %s1970_s24  ;;  %v2503_v53 = vsel %vm757_vm1, %v780_v50, %v2128_v19  ;;  %v786_v42 = vrot.slane %v2138_v21, 1  ;;  %v785_v50 = vrot.slane %v2146_v23, 1 }
  0xe2   : > { %v2479_v56 = vpop.permute.xlu2 %652  ;;  %4057 = vst [vmem:[#allocation55_spill] sm:$0xff] %v2503_v53 }
  0xe3   : > { %v633_v58 = vpop.permute.xlu1 %632  ;;  %v2488_v36 = vpop.permute.xlu0 %630 }
  0xe4   : > { %v2492_v33 = vsel %vm692_vm2, %v633_v58, %v2391_v52  ;;  %v2497_v40 = vsel %vm692_vm2, %v2361_v63, %v2488_v36  ;;  %v2518_v63 = vsel %vm757_vm1, %v786_v42, %v2138_v21 }
  0xe5   : > { %4056 = vst [vmem:[#allocation54_spill] sm:$0xff] %v2492_v33  ;;  %v798_v33 = vrot.slane %v2185_v30, 1 }
  0xe6   : > { %4060 = vst [vmem:[#allocation58_spill] sm:$0xff] %v2518_v63 }
  0xe8   : > { %902 = vrot.lane.b32.xlu2 %v2486_v62, %s1970_s24 }
  0xe9   : > { %900 = vrot.lane.b32.xlu1 %v2503_v53, %s1970_s24  ;;  %898 = vrot.lane.b32.xlu0 %v2507_v45, %s1970_s24  ;;  %v2531_v53 = vsel %vm757_vm1, %v783_v61, %v2143_v22  ;;  %v2534_v45 = vsel %vm757_vm1, %v785_v50, %v786_v42  ;;  %v791_v61 = vrot.slane %v2158_v25, 1  ;;  %v788_v42 = vrot.slane %v2161_v26, 1 }
  0xea   : > { %v2510_v58 = vpop.permute.xlu2 %658  ;;  %4062 = vst [vmem:[#allocation60_spill] sm:$0xff] %v2531_v53  ;;  %v797_v25 = vrot.slane %v2168_v27, 1  ;;  %v801_v27 = vrot.slane %v2306_v59, 1 }
  0xeb   : > { %4059 = vst [vmem:[#allocation57_spill] sm:$0xff] %v2510_v58  ;;  %v2521_v62 = vpop.permute.xlu1 %638  ;;  %v637_v4 = vpop.permute.xlu0 %636 }
  0xec   : > { %v2525_v57 = vsel %vm692_vm2, %v637_v4, %v2521_v62  ;;  %4063 = vst [vmem:[#allocation61_spill] sm:$0xff] %v2534_v45  ;;  %v2545_v4 = vsel %vm757_vm1, %v789_v5, %v2153_v24  ;;  %v2567_v24 = vsel %vm757_vm1, %v788_v42, %v789_v5  ;;  %v795_v5 = vrot.slane %v2188_v31, 1 }
  0xed   : > { %4061 = vst [vmem:[#allocation59_spill] sm:$0xff] %v2525_v57 }
  0xee   : > { %4064 = vst [vmem:[#allocation62_spill] sm:$0xff] %v2545_v4 }
  0xef   : > { %4067 = vst [vmem:[#allocation65_spill] sm:$0xff] %v2567_v24 }
  0xf0   : > { %908 = vrot.lane.b32.xlu2 %v2518_v63, %s1970_s24  ;;  %v792_v63 = vrot.slane %v2176_v29, 1 }
  0xf1   : > { %906 = vrot.lane.b32.xlu1 %v2531_v53, %s1970_s24  ;;  %904 = vrot.lane.b32.xlu0 %v2534_v45, %s1970_s24 }
  0xf2   : > { %v2537_v21 = vpop.permute.xlu2 %664  ;;  %v2564_v45 = vsel %vm757_vm1, %v791_v61, %v792_v63  ;;  %v794_v61 = vrot.slane %v2173_v28, 1 }
  0xf3   : > { %v645_v50 = vpop.permute.xlu1 %644  ;;  %v2550_v22 = vpop.permute.xlu0 %642  ;;  %4066 = vst [vmem:[#allocation64_spill] sm:$0xff] %v2564_v45 }
  0xf4   : > { %v2554_v57 = vsel %vm692_vm2, %v645_v50, %v2451_v48  ;;  %v2559_v53 = vsel %vm692_vm2, %v2418_v41, %v2550_v22  ;;  %v2578_v41 = vsel %vm757_vm1, %v797_v25, %v798_v33  ;;  %v2595_v25 = vsel %vm757_vm1, %v792_v63, %v2176_v29 }
  0xf5   : > { %4065 = vst [vmem:[#allocation63_spill] sm:$0xff] %v2554_v57 }
  0xf6   : > { %4069 = vst [vmem:[#allocation67_spill] sm:$0xff] %v2578_v41 }
  0xf7   : > { %4073 = vst [vmem:[#allocation71_spill] sm:$0xff] %v2595_v25 }
  0xf8   : > { %914 = vrot.lane.b32.xlu2 %v2545_v4, %s1970_s24 }
  0xf9   : > { %912 = vrot.lane.b32.xlu1 %v2564_v45, %s1970_s24  ;;  %910 = vrot.lane.b32.xlu0 %v2567_v24, %s1970_s24  ;;  %v2591_v45 = vsel %vm757_vm1, %v794_v61, %v795_v5  ;;  %v800_v24 = vrot.slane %v2272_v49, 1 }
  0xfa   : > { %v2571_v50 = vpop.permute.xlu2 %670  ;;  %4072 = vst [vmem:[#allocation70_spill] sm:$0xff] %v2591_v45 }
  0xfb   : > { %4068 = vst [vmem:[#allocation66_spill] sm:$0xff] %v2571_v50  ;;  %v2582_v42 = vpop.permute.xlu1 %650  ;;  %v649_v4 = vpop.permute.xlu0 %648 }
  0xfc   : > { %4070 = vst [vmem:[#allocation68_spill] sm:$0xff] %v2582_v42  ;;  %v2586_v57 = vsel %vm692_vm2, %v649_v4, %v2582_v42  ;;  %v2606_v4 = vsel %vm757_vm1, %v800_v24, %v801_v27  ;;  %v2627_v24 = vsel %vm757_vm1, %v795_v5, %v2188_v31 }
  0xfd   : > { %4071 = vst [vmem:[#allocation69_spill] sm:$0xff] %v2586_v57  ;;  %v2715_v57 = vstv %s1848_s7 }
  0xfe   : > { %4074 = vst [vmem:[#allocation72_spill] sm:$0xff] %v2606_v4 }
  0xff   : > { %4078 = vst [vmem:[#allocation76_spill] sm:$0xff] %v2627_v24 }
 0x100   : > { %920 = vrot.lane.b32.xlu2 %v2578_v41, %s1970_s24 }
 0x101   : > { %918 = vrot.lane.b32.xlu1 %v2591_v45, %s1970_s24  ;;  %916 = vrot.lane.b32.xlu0 %v2595_v25, %s1970_s24  ;;  %v2623_v45 = vsel %vm757_vm1, %v798_v33, %v2185_v30  ;;  %v804_v25 = vrot.slane %v2295_v55, 1  ;;  %v803_v30 = vrot.slane %v2309_v60, 1 }
 0x102   : > { %v2599_v28 = vpop.permute.xlu2 %676  ;;  %4077 = vst [vmem:[#allocation75_spill] sm:$0xff] %v2623_v45 }
 0x103   : > { %v657_v61 = vpop.permute.xlu1 %656  ;;  %v2608_v41 = vpop.permute.xlu0 %654 }
 0x104   : > { %v2612_v63 = vsel %vm692_vm2, %v657_v61, %v2510_v58  ;;  %v2617_v49 = vsel %vm692_vm2, %v2479_v56, %v2608_v41  ;;  %v2638_v56 = vsel %vm757_vm1, %v804_v25, %v2295_v55  ;;  %v1034_v55 = vrot.slane %v2071_v8, 7 }
 0x105   : > { %4075 = vst [vmem:[#allocation73_spill] sm:$0xff] %v2612_v63  ;;  %v1032_v63 = vrot.slane %v2040_v0, 7 }
 0x106   : > { %4076 = vst [vmem:[#allocation74_spill] sm:$0xff] %v2617_v49 }
 0x107   : > { %4080 = vst [vmem:[#allocation78_spill] sm:$0xff] %v2638_v56 }
 0x108   : > { %926 = vrot.lane.b32.xlu2 %v2606_v4, %s1970_s24 }
 0x109   : > { %924 = vrot.lane.b32.xlu1 %v2623_v45, %s1970_s24  ;;  %922 = vrot.lane.b32.xlu0 %v2627_v24, %s1970_s24  ;;  %v2651_v24 = vsel %vm757_vm1, %v801_v27, %v2306_v59  ;;  %v2654_v45 = vsel %vm757_vm1, %v803_v30, %v804_v25  ;;  %v2670_v27 = vsel %vm1031_vm3, %v1032_v63, %v1034_v55  ;;  %v1033_v30 = vrot.slane %v2056_v3, 7 }
 0x10a   : > { %v2630_v61 = vpop.permute.xlu2 %682  ;;  %4083 = vst [vmem:[#allocation81_spill] sm:$0xff] %v2651_v24  ;;  %v2687_v55 = vstv %s1847_s25 }
 0x10b   : > { %4079 = vst [vmem:[#allocation77_spill] sm:$0xff] %v2630_v61  ;;  %v2641_v33 = vpop.permute.xlu1 %662  ;;  %v661_v5 = vpop.permute.xlu0 %660  ;;  %v1405_v60 = vmul.f32 %v2687_v55, %v2056_v3 }
 0x10c   : > { %4081 = vst [vmem:[#allocation79_spill] sm:$0xff] %v2641_v33  ;;  %v2645_v4 = vsel %vm692_vm2, %v661_v5, %v2641_v33  ;;  %v2663_v5 = vld [vmem:[%s3877_s1] sm:$0x3] }
 0x10d   : > { %4082 = vst [vmem:[#allocation80_spill] sm:$0xff] %v2645_v4  ;;  %v3951_v25 = vperm.slane %v2663_v5, 1 }
 0x10e   : > { %4084 = vst [vmem:[#allocation82_spill] sm:$0xff] %v2654_v45 }
 0x10f   : > { %4085 = vst [vmem:[#allocation83_spill] sm:$0xff] %v2670_v27  ;;  %vm2691_vm5 = vcmp.eq.s32.totalorder %v3951_v25, 15 }
 0x110   : > { %932 = vrot.lane.b32.xlu2 %v2638_v56, %s1970_s24 }
 0x111   : > { %930 = vrot.lane.b32.xlu1 %v2651_v24, %s1970_s24  ;;  %928 = vrot.lane.b32.xlu0 %v2654_v45, %s1970_s24 }
 0x112   : > { %v2658_v49 = vpop.permute.xlu2 %688 }
 0x113   : > { %v669_v4 = vpop.permute.xlu1 %668  ;;  %v2674_v56 = vpop.permute.xlu0 %666 }
 0x114   : > { %4086 = vst [vmem:[#allocation84_spill] sm:$0xff] %v2674_v56  ;;  %v2678_v59 = vsel %vm692_vm2, %v669_v4, %v2571_v50  ;;  %v2683_v24 = vsel %vm692_vm2, %v2537_v21, %v2674_v56  ;;  %v2697_v4 = vsel %vm1031_vm3, %v2056_v3, %v1033_v30  ;;  %v2701_v21 = vsel %vm1031_vm3, %v2040_v0, %v1032_v63 }
 0x115   : > { %4087 = vst [vmem:[#allocation85_spill] sm:$0xff] %v2678_v59  ;;  %v1039_v59 = vrot.slane %v2086_v11, 7  ;;  %v741_v63 = vsel %vm692_vm2, %v2488_v36, %v2086_v11  ;;  %v1038_v36 = vrot.slane %v2063_v6, 7  ;;  %v1036_v3 = vrot.slane %v2068_v7, 7 }
 0x116   : > { %4088 = vst [vmem:[#allocation86_spill] sm:$0xff] %v2683_v24  ;;  %v2706_v24 = vstv %s1846_s27 }
 0x117   : > { %4091 = vst [vmem:[#allocation87_spill] sm:$0xff] %v2697_v4  ;;  %v2732_v31 = vsel %vm1031_vm3, %v2086_v11, %v1039_v59  ;;  %v2750_v29 = vsel %vm1031_vm3, %v1033_v30, %v1036_v3  ;;  %v1044_v11 = vrot.slane %v2101_v14, 7  ;;  %v1040_v30 = vrot.slane %v2083_v10, 7 }
 0x118   : > { %1148 = vrot.lane.b32.xlu2 %v2670_v27, %s1971_s9  ;;  %4092 = vst [vmem:[#allocation88_spill] sm:$0xff] %v2701_v21  ;;  %v2704_v27 = vstv %s447_s26 }
 0x119   : > { %v1307_v25 = vmul.f32 %v2704_v27, %v2244_v43  ;;  %1146 = vrot.lane.b32.xlu1 %v2697_v4, %s1971_s9  ;;  %1144 = vrot.lane.b32.xlu0 %v2701_v21, %s1971_s9  ;;  %4093 = vst [vmem:[#allocation89_spill] sm:$0xff] %v2732_v31  ;;  %v1470_v4 = vmul.f32 %v2715_v57, %v741_v63 }
 0x11a   : > { %v2708_v50 = vpop.permute.xlu2 %872  ;;  %v2747_v21 = vsel %vm1031_vm3, %v2063_v6, %v1038_v36  ;;  %4097 = vst [vmem:[#allocation93_spill] sm:$0xff] %v2750_v29 }
 0x11b   : > { %v983_v33 = vsel %vm934_vm4, %v2708_v50, %v2341_v44  ;;  %v2736_v56 = vpop.permute.xlu1 %674  ;;  %v673_v42 = vpop.permute.xlu0 %672  ;;  %4096 = vst [vmem:[#allocation92_spill] sm:$0xff] %v2747_v21 }
 0x11c   : > { %v1000_v58 = vsel %vm2691_vm5, %v2341_v44, %v983_v33  ;;  %4094 = vst [vmem:[#allocation90_spill] sm:$0xff] %v2736_v56  ;;  %v2740_v33 = vsel %vm692_vm2, %v673_v42, %v2736_v56  ;;  %v1042_v42 = vrot.slane %v2078_v9, 7 }
 0x11d   : > { %v1340_v43 = vmul.f32 %v2706_v24, %v1000_v58  ;;  %4095 = vst [vmem:[#allocation91_spill] sm:$0xff] %v2740_v33  ;;  %v4130_v33 = vld [vmem:[#allocation37_spill] sm:$0xff] }
 0x11f   : > { %v1372_v44 = vadd.f32 %v1340_v43, %v1307_v25 }
 0x120   : > { %1154 = vrot.lane.b32.xlu2 %v2732_v31, %s1971_s9  ;;  %v1045_v31 = vrot.slane %v2098_v13, 7 }
 0x121   : > { %v1437_v58 = vadd.f32 %v1405_v60, %v1372_v44  ;;  %1152 = vrot.lane.b32.xlu1 %v2747_v21, %s1971_s9  ;;  %1150 = vrot.lane.b32.xlu0 %v2750_v29, %s1971_s9  ;;  %v2763_v60 = vsel %vm1031_vm3, %v2101_v14, %v1044_v11  ;;  %v2784_v29 = vsel %vm1031_vm3, %v1038_v36, %v1040_v30  ;;  %v1048_v21 = vrot.slane %v2116_v17, 7 }
 0x122   : > { %v2753_v25 = vpop.permute.xlu2 %878  ;;  %4099 = vst [vmem:[#allocation95_spill] sm:$0xff] %v2763_v60  ;;  %v1046_v36 = vrot.slane %v2093_v12, 7  ;;  %v1411_v30 = vmul.f32 %v2687_v55, %v2078_v9 }
 0x123   : > { %v2755_v43 = vadd.f32 %v1470_v4, %v1437_v58  ;;  %v681_v63 = vpop.permute.xlu1 %680  ;;  %v2767_v3 = vpop.permute.xlu0 %678  ;;  %v2781_v58 = vsel %vm1031_vm3, %v1039_v59, %v1042_v42  ;;  %4103 = vst [vmem:[#allocation99_spill] sm:$0xff] %v2784_v29  ;;  %v744_v42 = vsel %vm692_vm2, %v2550_v22, %v2116_v17  ;;  %v605_v17 = vsel %vm555_vm0, %v2047_v1, %v2226_v37 }
 0x124   : > { %v2771_v4 = vsel %vm692_vm2, %v681_v63, %v2630_v61  ;;  %v2776_v44 = vsel %vm692_vm2, %v2599_v28, %v2767_v3  ;;  %4102 = vst [vmem:[#allocation98_spill] sm:$0xff] %v2781_v58  ;;  %v604_v22 = vsel %vm555_vm0, %v2049_v2, %v2228_v38  ;;  %v2837_v1 = vsel %vm1031_vm3, %v1044_v11, %v1046_v36  ;;  %v4123_v61 = vld [vmem:[#allocation31_spill] sm:$0xff] }
 0x125   : > { %4098 = vst [vmem:[#allocation94_spill] sm:$0xff] %v2755_v43  ;;  %v1313_v43 = vmul.f32 %v2704_v27, %v2256_v47  ;;  %v2841_v2 = vsel %vm1031_vm3, %v2098_v13, %v1045_v31  ;;  %v1050_v38 = vrot.slane %v2113_v16, 7 }
 0x126   : > { %4100 = vst [vmem:[#allocation96_spill] sm:$0xff] %v2771_v4  ;;  %v2810_v4 = vsel %vm1031_vm3, %v1045_v31, %v1048_v21  ;;  %v2857_v31 = vmul.f32 %v2704_v27, %v605_v17 }
 0x127   : > { %4101 = vst [vmem:[#allocation97_spill] sm:$0xff] %v2776_v44  ;;  %v1054_v44 = vrot.slane %v2128_v19, 7 }
 0x128   : > { %1160 = vrot.lane.b32.xlu2 %v2763_v60, %s1971_s9  ;;  %4104 = vst [vmem:[#allocation100_spill] sm:$0xff] %v2810_v4  ;;  %v1404_v60 = vmul.f32 %v2687_v55, %v2040_v0 }
 0x129   : > { %1158 = vrot.lane.b32.xlu1 %v2781_v58, %s1971_s9  ;;  %1156 = vrot.lane.b32.xlu0 %v2784_v29, %s1971_s9  ;;  %4107 = vst [vmem:[#allocation103_spill] sm:$0xff] %v2837_v1 }
 0x12a   : > { %v2788_v63 = vpop.permute.xlu2 %884  ;;  %4108 = vst [vmem:[#allocation104_spill] sm:$0xff] %v2841_v2 }
 0x12b   : > { %v986_v28 = vsel %vm934_vm4, %v2788_v63, %v2399_v54  ;;  %v2818_v58 = vpop.permute.xlu1 %686  ;;  %v685_v29 = vpop.permute.xlu0 %684 }
 0x12c   : > { %v1006_v59 = vsel %vm2691_vm5, %v2399_v54, %v986_v28  ;;  %v606_v54 = vsel %vm555_vm0, %v2040_v0, %v2196_v32  ;;  %v608_v28 = vsel %vm555_vm0, %v2063_v6, %v2214_v35  ;;  %4105 = vst [vmem:[#allocation101_spill] sm:$0xff] %v2818_v58  ;;  %v611_v32 = vsel %vm555_vm0, %v2093_v12, %v2232_v39  ;;  %v4126_v0 = vld [vmem:[#allocation22_spill] sm:$0xff] }
 0x12d   : > { %v1346_v47 = vmul.f32 %v2706_v24, %v1006_v59  ;;  %v2828_v59 = vsel %vm692_vm2, %v685_v29, %v2818_v58  ;;  %v1476_v35 = vmul.f32 %v2715_v57, %v744_v42  ;;  %v2847_v12 = vmul.f32 %v2704_v27, %v606_v54  ;;  %v4110_v54 = vld [vmem:[#allocation17_spill] sm:$0xff]  ;;  %v4112_v29 = vld [vmem:[#allocation14_spill] sm:$0xff] }
 0x12e   : > { %4106 = vst [vmem:[#allocation102_spill] sm:$0xff] %v2828_v59  ;;  %v2851_v39 = vmul.f32 %v2704_v27, %v2206_v34  ;;  %v2854_v11 = vmul.f32 %v2704_v27, %v608_v28  ;;  %v607_v42 = vsel %vm555_vm0, %v2071_v8, %v2252_v46  ;;  %v609_v34 = vsel %vm555_vm0, %v2083_v10, %v4110_v54  ;;  %v4113_v46 = vld [vmem:[#allocation21_spill] sm:$0xff]  ;;  %v4121_v58 = vld [vmem:[#allocation26_spill] sm:$0xff] }
 0x12f   : > { %v1378_v21 = vadd.f32 %v1346_v47, %v1313_v43  ;;  %v1052_v43 = vrot.slane %v2131_v20, 7  ;;  %v1306_v28 = vmul.f32 %v2704_v27, %v604_v22  ;;  %v2874_v17 = vmul.f32 %v2704_v27, %v611_v32 }
 0x130   : > { %1166 = vrot.lane.b32.xlu2 %v2810_v4, %s1971_s9  ;;  %v2878_v4 = vmul.f32 %v2704_v27, %v4112_v29  ;;  %v1051_v29 = vrot.slane %v2108_v15, 7 }
 0x131   : > { %v1443_v37 = vadd.f32 %v1411_v30, %v1378_v21  ;;  %v4109_v30 = vld [vmem:[#allocation15_spill] sm:$0xff]  ;;  %1164 = vrot.lane.b32.xlu1 %v2837_v1, %s1971_s9  ;;  %1162 = vrot.lane.b32.xlu0 %v2841_v2, %s1971_s9  ;;  %v2894_v32 = vsel %vm1031_vm3, %v1050_v38, %v1052_v43  ;;  %v2904_v2 = vmul.f32 %v2704_v27, %v609_v34 }
 0x132   : > { %v2859_v36 = vpop.permute.xlu2 %890  ;;  %v614_v47 = vsel %vm555_vm0, %v2123_v18, %v4109_v30  ;;  %4117 = vst [vmem:[#allocation17_spill] sm:$0xff] %v2894_v32  ;;  %v2898_v30 = vmul.f32 %v2704_v27, %v607_v42  ;;  %v4120_v43 = vld [vmem:[#allocation19_spill] sm:$0xff]  ;;  %v612_v42 = vsel %vm555_vm0, %v2113_v16, %v4121_v58 }
 0x133   : > { %v2870_v21 = vadd.f32 %v1476_v35, %v1443_v37  ;;  %v610_v35 = vsel %vm555_vm0, %v2101_v14, %v4113_v46  ;;  %v4114_v37 = vperm.slane %v2663_v5, 0  ;;  %v2901_v54 = vmul.f32 %v2704_v27, %v614_v47  ;;  %v4119_v46 = vld [vmem:[#allocation18_spill] sm:$0xff]  ;;  %v871_v1 = vpop.permute.xlu1 %870 }
 0x134   : > { %v2914_v59 = vmul.f32 %v2704_v27, %v4120_v43  ;;  %v935_v47 = vsel %vm934_vm4, %v871_v1, %v2708_v50  ;;  %v742_v43 = vsel %vm692_vm2, %v2391_v52, %v2078_v9  ;;  %v2942_v50 = vsel %vm1031_vm3, %v2108_v15, %v1051_v29 }
 0x135   : > { %4111 = vst [vmem:[#allocation15_spill] sm:$0xff] %v2870_v21  ;;  %vm2889_vm6 = vcmp.eq.s32.totalorder %v4114_v37, 15  ;;  %v2908_v37 = vmul.f32 %v2704_v27, %v4119_v46  ;;  %v2910_v21 = vpop.permute.xlu0 %690  ;;  %v2927_v46 = vmul.f32 %v2704_v27, %v610_v35  ;;  %v2946_v1 = vsel %vm1031_vm3, %v2113_v16, %v1050_v38  ;;  %v4127_v35 = vld [vmem:[#allocation28_spill] sm:$0xff] }
 0x136   : > { %4118 = vst [vmem:[#allocation14_spill] sm:$0xff] %v2901_v54  ;;  %v2924_v34 = vsel %vm692_vm2, %v2658_v49, %v2910_v21  ;;  %v999_v58 = vsel %vm2889_vm6, %v4123_v61, %v935_v47  ;;  %v1057_v9 = vrot.slane %v2146_v23, 7  ;;  %v1319_v52 = vmul.f32 %v2704_v27, %v4126_v0 }
 0x137   : > { %4122 = vst [vmem:[#allocation21_spill] sm:$0xff] %v2924_v34  ;;  %v1339_v49 = vmul.f32 %v2706_v24, %v999_v58  ;;  %v2952_v61 = vmul.f32 %v2704_v27, %v612_v42  ;;  %v2956_v47 = vmul.f32 %v2704_v27, %v4127_v35  ;;  %v4128_v58 = vld [vmem:[#allocation30_spill] sm:$0xff]  ;;  %v2965_v16 = vmul.f32 %v2715_v57, %v742_v43 }
 0x138   : > { %1172 = vrot.lane.b32.xlu2 %v2894_v32, %s1971_s9  ;;  %4124 = vst [vmem:[#allocation18_spill] sm:$0xff] %v2942_v50  ;;  %v2960_v32 = vmul.f32 %v2704_v27, %v4128_v58  ;;  %v747_v38 = vsel %vm692_vm2, %v2608_v41, %v2146_v23  ;;  %v1469_v35 = vmul.f32 %v2715_v57, %v2497_v40  ;;  %v1056_v41 = vrot.slane %v2123_v18, 7 }
 0x139   : > { %4125 = vst [vmem:[#allocation19_spill] sm:$0xff] %v2946_v1  ;;  %v1371_v0 = vadd.f32 %v1339_v49, %v1306_v28  ;;  %v1417_v58 = vmul.f32 %v2687_v55, %v2108_v15  ;;  %1170 = vrot.lane.b32.xlu1 %v2942_v50, %s1971_s9  ;;  %1168 = vrot.lane.b32.xlu0 %v2946_v1, %s1971_s9 }
 0x13a   : > { %v2962_v34 = vpop.permute.xlu2 %896  ;;  %v2988_v40 = vsel %vm1031_vm3, %v2146_v23, %v1057_v9  ;;  %v1407_v50 = vmul.f32 %v2687_v55, %v2068_v7 }
 0x13b   : > { %v989_v42 = vsel %vm934_vm4, %v2962_v34, %v2458_v51  ;;  %v1436_v28 = vadd.f32 %v1404_v60, %v1371_v0  ;;  %4129 = vst [vmem:[#allocation26_spill] sm:$0xff] %v2988_v40  ;;  %v877_v1 = vpop.permute.xlu1 %876  ;;  %v1406_v60 = vmul.f32 %v2687_v55, %v2071_v8  ;;  %v3014_v8 = vsel %vm1031_vm3, %v2123_v18, %v1056_v41 }
 0x13c   : > { %v1012_v43 = vsel %vm2691_vm5, %v2458_v51, %v989_v42  ;;  %v743_v51 = vsel %vm692_vm2, %v2521_v62, %v2098_v13  ;;  %v1482_v42 = vmul.f32 %v2715_v57, %v747_v38  ;;  %v984_v23 = vsel %vm934_vm4, %v877_v1, %v4130_v33  ;;  %v4131_v38 = vld [vmem:[#allocation38_spill] sm:$0xff]  ;;  %4132 = vst [vmem:[#allocation31_spill] sm:$0xff] %v3014_v8 }
 0x13d   : > { %v1352_v49 = vmul.f32 %v2706_v24, %v1012_v43  ;;  %v875_v0 = vpop.permute.xlu0 %874  ;;  %v3002_v54 = vadd.f32 %v1469_v35, %v1436_v28  ;;  %v1002_v62 = vsel %vm2691_vm5, %v4130_v33, %v984_v23  ;;  %v3020_v33 = vsel %vm1031_vm3, %v1051_v29, %v1054_v44 }
 0x13e   : > { %v936_v56 = vsel %vm934_vm4, %v875_v0, %v877_v1  ;;  %v1342_v35 = vmul.f32 %v2706_v24, %v1002_v62  ;;  %4133 = vst [vmem:[#allocation22_spill] sm:$0xff] %v3020_v33  ;;  %v3030_v18 = vmul.f32 %v2715_v57, %v743_v51  ;;  %v4136_v62 = vld [vmem:[#allocation59_spill] sm:$0xff] }
 0x13f   : > { %v1384_v43 = vadd.f32 %v1352_v49, %v1319_v52  ;;  %v1001_v7 = vsel %vm2889_vm6, %v4131_v38, %v936_v56  ;;  %v3990_v52 = vrot.slane %v2161_v26, 7  ;;  %v3025_v56 = vsel %vm692_vm2, %v2451_v48, %v2108_v15  ;;  %v4134_v49 = vld [vmem:[#allocation54_spill] sm:$0xff] }
 0x140   : > { %1178 = vrot.lane.b32.xlu2 %v2988_v40, %s1971_s9  ;;  %v1341_v28 = vmul.f32 %v2706_v24, %v1001_v7  ;;  %v1471_v0 = vmul.f32 %v2715_v57, %v4134_v49  ;;  %v1473_v38 = vmul.f32 %v2715_v57, %v4136_v62  ;;  %v1374_v44 = vadd.f32 %v1342_v35, %v2878_v4 }
 0x141   : > { %v1449_v1 = vadd.f32 %v1417_v58, %v1384_v43  ;;  %v4135_v58 = vld [vmem:[#allocation6_spill] sm:$0xff]  ;;  %v1475_v15 = vmul.f32 %v2715_v57, %v2559_v53  ;;  %1176 = vrot.lane.b32.xlu1 %v3014_v8, %s1971_s9  ;;  %1174 = vrot.lane.b32.xlu0 %v3020_v33, %s1971_s9  ;;  %v1410_v48 = vmul.f32 %v2687_v55, %v2083_v10  ;;  %v4139_v33 = vld [vmem:[#allocation9_spill] sm:$0xff]  ;;  %v4140_v8 = vld [vmem:[#allocation12_spill] sm:$0xff] }
 0x142   : > { %v3032_v23 = vpop.permute.xlu2 %902  ;;  %v1060_v43 = vrot.slane %v4135_v58, 7  ;;  %v1373_v29 = vadd.f32 %v1341_v28, %v2857_v31  ;;  %v3053_v4 = vsel %vm1031_vm3, %v2161_v26, %v3990_v52  ;;  %v1439_v31 = vadd.f32 %v1407_v50, %v1374_v44  ;;  %v4138_v28 = vld [vmem:[#allocation5_spill] sm:$0xff] }
 0x143   : > { %v3039_v7 = vadd.f32 %v1482_v42, %v1449_v1  ;;  %v1408_v53 = vmul.f32 %v2687_v55, %v2063_v6  ;;  %v4137_v42 = vld [vmem:[#allocation7_spill] sm:$0xff]  ;;  %v883_v35 = vpop.permute.xlu1 %882  ;;  %v1409_v49 = vmul.f32 %v2687_v55, %v4138_v28  ;;  %v1063_v40 = vrot.slane %v4139_v33, 7 }
 0x144   : > { %v1438_v51 = vadd.f32 %v1406_v60, %v1373_v29  ;;  %v1058_v1 = vrot.slane %v4137_v42, 7  ;;  %v3061_v10 = vsel %vm1031_vm3, %v1057_v9, %v1060_v43  ;;  %v1066_v52 = vrot.slane %v4140_v8, 7  ;;  %v4141_v60 = vld [vmem:[#allocation42_spill] sm:$0xff]  ;;  %v4142_v42 = vld [vmem:[#allocation41_spill] sm:$0xff] }
 0x145   : > { %v881_v62 = vpop.permute.xlu0 %880  ;;  %v938_v50 = vsel %vm934_vm4, %v883_v35, %v2788_v63  ;;  %v4143_v43 = vld [vmem:[#allocation33_spill] sm:$0xff] }
 0x146   : > { %v937_v6 = vsel %vm934_vm4, %v2753_v25, %v881_v62  ;;  %v985_v44 = vsel %vm934_vm4, %v881_v62, %v4141_v60  ;;  %v3071_v29 = vadd.f32 %v1471_v0, %v1438_v51  ;;  %v1005_v9 = vsel %vm2889_vm6, %v4142_v42, %v938_v50  ;;  %v4144_v50 = vld [vmem:[#allocation68_spill] sm:$0xff] }
 0x147   : > { %v1003_v28 = vsel %vm2889_vm6, %v4143_v43, %v937_v6  ;;  %v1004_v63 = vsel %vm2691_vm5, %v4141_v60, %v985_v44  ;;  %v3085_v25 = vadd.f32 %v2965_v16, %v1439_v31  ;;  %v1345_v0 = vmul.f32 %v2706_v24, %v1005_v9  ;;  %v4145_v60 = vld [vmem:[#allocation84_spill] sm:$0xff] }
 0x148   : > { %1184 = vrot.lane.b32.xlu2 %v3053_v4, %s1971_s9  ;;  %v1343_v51 = vmul.f32 %v2706_v24, %v1003_v28  ;;  %v1344_v35 = vmul.f32 %v2706_v24, %v1004_v63  ;;  %v3091_v62 = vsel %vm1031_vm3, %v1056_v41, %v1058_v1  ;;  %v746_v6 = vsel %vm692_vm2, %v4144_v50, %v2128_v19  ;;  %v4146_v42 = vld [vmem:[#allocation8_spill] sm:$0xff]  ;;  %v4147_v28 = vld [vmem:[#allocation58_spill] sm:$0xff] }
 0x149   : > { %v750_v44 = vsel %vm692_vm2, %v4145_v60, %v4140_v8  ;;  %v1423_v16 = vmul.f32 %v2687_v55, %v4135_v58  ;;  %v1064_v9 = vrot.slane %v4146_v42, 7  ;;  %v1377_v43 = vadd.f32 %v1345_v0, %v2898_v30  ;;  %1182 = vrot.lane.b32.xlu1 %v3061_v10, %s1971_s9  ;;  %1180 = vrot.lane.b32.xlu0 %v3091_v62, %s1971_s9 }
 0x14a   : > { %v3101_v31 = vpop.permute.xlu2 %908  ;;  %v1375_v41 = vadd.f32 %v1343_v51, %v2847_v12  ;;  %v1376_v1 = vadd.f32 %v1344_v35, %v2851_v39  ;;  %v1413_v30 = vmul.f32 %v2687_v55, %v2098_v13  ;;  %v3120_v12 = vsel %vm1031_vm3, %v1063_v40, %v1066_v52  ;;  %v4152_v52 = vld [vmem:[#allocation11_spill] sm:$0xff] }
 0x14b   : > { %v992_v19 = vsel %vm934_vm4, %v3101_v31, %v4147_v28  ;;  %4148 = vst [vmem:[#allocation28_spill] sm:$0xff] %v3120_v12  ;;  %v1442_v39 = vadd.f32 %v1410_v48, %v1377_v43  ;;  %v889_v35 = vpop.permute.xlu1 %888  ;;  %v1412_v50 = vmul.f32 %v2687_v55, %v2101_v14  ;;  %v4149_v42 = vrot.slane %v2161_v26, 7 }
 0x14c   : > { %v1018_v8 = vsel %vm2691_vm5, %v4147_v28, %v992_v19  ;;  %v1440_v63 = vadd.f32 %v1408_v53, %v1375_v41  ;;  %v1441_v0 = vadd.f32 %v1409_v49, %v1376_v1  ;;  %v3132_v13 = vsel %vm1031_vm3, %v4139_v33, %v1063_v40  ;;  %v4153_v49 = vld [vmem:[#allocation47_spill] sm:$0xff] }
 0x14d   : > { %v1358_v51 = vmul.f32 %v2706_v24, %v1018_v8  ;;  %v887_v60 = vpop.permute.xlu0 %886  ;;  %v3128_v28 = vsel %vm1031_vm3, %v4149_v42, %v1064_v9  ;;  %4151 = vst [vmem:[#allocation37_spill] sm:$0xff] %v3132_v13  ;;  %v1068_v48 = vrot.slane %v4152_v52, 7  ;;  %v987_v43 = vsel %vm934_vm4, %v889_v35, %v4153_v49  ;;  %v4154_v9 = vld [vmem:[#allocation48_spill] sm:$0xff]  ;;  %v4155_v8 = vld [vmem:[#allocation13_spill] sm:$0xff] }
 0x14e   : > { %4150 = vst [vmem:[#allocation30_spill] sm:$0xff] %v3128_v28  ;;  %v939_v41 = vsel %vm934_vm4, %v887_v60, %v889_v35  ;;  %v3139_v14 = vadd.f32 %v1473_v38, %v1440_v63  ;;  %v1008_v26 = vsel %vm2691_vm5, %v4153_v49, %v987_v43  ;;  %v3152_v33 = vadd.f32 %v1475_v15, %v1442_v39  ;;  %v4157_v60 = vld [vmem:[#allocation40_spill] sm:$0xff]  ;;  %v4159_v52 = vld [vmem:[#allocation57_spill] sm:$0xff] }
 0x14f   : > { %v1390_v53 = vadd.f32 %v1358_v51, %v2960_v32  ;;  %v1007_v40 = vsel %vm2889_vm6, %v4154_v9, %v939_v41  ;;  %v3150_v32 = vadd.f32 %v3030_v18, %v1441_v0  ;;  %v1348_v38 = vmul.f32 %v2706_v24, %v1008_v26  ;;  %v4156_v51 = vld [vmem:[#allocation29_spill] sm:$0xff] }
 0x150   : > { %1190 = vrot.lane.b32.xlu2 %v3120_v12, %s1971_s9  ;;  %v1347_v19 = vmul.f32 %v2706_v24, %v1007_v40  ;;  %v1070_v63 = vrot.slane %v4155_v8, 7  ;;  %v3160_v35 = vsel %vm555_vm0, %v2131_v20, %v4156_v51  ;;  %v3164_v42 = vmul.f32 %v2704_v27, %v4157_v60  ;;  %v1903_v40 = vld [vmem:[%s2037_s8 + $0x60] sm:$0xff]  ;;  %v1905_v51 = vld [vmem:[%s2037_s8 + $0x58] sm:$0xff] }
 0x151   : > { %v1455_v1 = vadd.f32 %v1423_v16, %v1390_v53  ;;  %v1488_v18 = vmul.f32 %v2715_v57, %v750_v44  ;;  %v4158_v16 = vld [vmem:[#allocation10_spill] sm:$0xff]  ;;  %v1478_v0 = vmul.f32 %v2715_v57, %v3025_v56  ;;  %v3175_v20 = vsel %vm692_vm2, %v4159_v52, %v4135_v58  ;;  %v4160_v44 = vld [vmem:[#allocation63_spill] sm:$0xff]  ;;  %1188 = vrot.lane.b32.xlu1 %v3128_v28, %s1971_s9  ;;  %v4162_v58 = vld [vmem:[#allocation24_spill] sm:$0xff] }
 0x152   : > { %v3167_v15 = vpop.permute.xlu2 %914  ;;  %v3991_v39 = vrot.slane %v4158_v16, 7  ;;  %v1380_v53 = vadd.f32 %v1348_v38, %v2914_v59  ;;  %v1379_v49 = vadd.f32 %v1347_v19, %v2854_v11  ;;  %v1477_v43 = vmul.f32 %v2715_v57, %v4160_v44  ;;  %1186 = vrot.lane.b32.xlu0 %v3132_v13, %s1971_s9  ;;  %v1904_v19 = vld [vmem:[%s2037_s8 + $0x50] sm:$0xff] }
 0x153   : > { %v3182_v41 = vmul.f32 %v2715_v57, %v746_v6  ;;  %v3188_v56 = vadd.f32 %v1488_v18, %v1455_v1  ;;  %v753_v59 = vsel %vm692_vm2, %v2767_v3, %v4162_v58  ;;  %v3194_v9 = vsel %vm1031_vm3, %v1068_v48, %v1070_v63  ;;  %v895_v38 = vpop.permute.xlu1 %894  ;;  %v4164_v63 = vld [vmem:[#allocation52_spill] sm:$0xff]  ;;  %v4166_v44 = vld [vmem:[#allocation43_spill] sm:$0xff] }
 0x154   : > { %v1445_v26 = vadd.f32 %v1413_v30, %v1380_v53  ;;  %v1444_v11 = vadd.f32 %v1412_v50, %v1379_v49  ;;  %v1416_v6 = vmul.f32 %v1903_v40, %v2687_v55  ;;  %v1414_v8 = vmul.f32 %v1904_v19, %v2687_v55  ;;  %v4165_v53 = vld [vmem:[#allocation51_spill] sm:$0xff]  ;;  %v3233_v19 = vld [vmem:[%s2037_s8 + $0xc0] sm:$0xff] }
 0x155   : > { %4161 = vst [vmem:[#allocation38_spill] sm:$0xff] %v3188_v56  ;;  %v1415_v1 = vmul.f32 %v1905_v51, %v2687_v55  ;;  %v893_v60 = vpop.permute.xlu0 %892  ;;  %v3206_v3 = vsel %vm1031_vm3, %v4158_v16, %v3991_v39  ;;  %v941_v30 = vsel %vm934_vm4, %v895_v38, %v2962_v34  ;;  %v3237_v51 = vsel %vm1031_vm3, %v3233_v19, %v1068_v48  ;;  %v1910_v13 = vld [vmem:[%s2037_s8 + $0x70] sm:$0xff] }
 0x156   : > { %4163 = vst [vmem:[#allocation54_spill] sm:$0xff] %v3206_v3  ;;  %v940_v50 = vsel %vm934_vm4, %v2859_v36, %v893_v60  ;;  %v988_v18 = vsel %vm934_vm4, %v893_v60, %v4164_v63  ;;  %v3214_v52 = vadd.f32 %v1477_v43, %v1444_v11  ;;  %v1011_v49 = vsel %vm2889_vm6, %v4165_v53, %v941_v30  ;;  %v4168_v60 = vld [vmem:[#allocation69_spill] sm:$0xff]  ;;  %v1909_v53 = vld [vmem:[%s2037_s8 + $0x78] sm:$0xff] }
 0x157   : > { %v1009_v40 = vsel %vm2889_vm6, %v4166_v44, %v940_v50  ;;  %v1010_v34 = vsel %vm2691_vm5, %v4164_v63, %v988_v18  ;;  %v3227_v36 = vadd.f32 %v1478_v0, %v1445_v26  ;;  %v1351_v43 = vmul.f32 %v2706_v24, %v1011_v49  ;;  %4167 = vst [vmem:[#allocation6_spill] sm:$0xff] %v3237_v51  ;;  %v4169_v50 = vld [vmem:[#allocation74_spill] sm:$0xff]  ;;  %v4170_v18 = vld [vmem:[#allocation16_spill] sm:$0xff] }
 0x158   : > { %1196 = vrot.lane.b32.xlu2 %v3194_v9, %s1971_s9  ;;  %v1349_v11 = vmul.f32 %v2706_v24, %v1009_v40  ;;  %v1350_v38 = vmul.f32 %v2706_v24, %v1010_v34  ;;  %v1479_v30 = vmul.f32 %v2715_v57, %v4168_v60  ;;  %v1481_v0 = vmul.f32 %v2715_v57, %v4169_v50  ;;  %v4171_v40 = vld [vmem:[#allocation67_spill] sm:$0xff]  ;;  %v3254_v60 = vld [vmem:[%s2037_s8 + $0xc8] sm:$0xff] }
 0x159   : > { %v1494_v26 = vmul.f32 %v2715_v57, %v753_v59  ;;  %v1383_v49 = vadd.f32 %v1351_v43, %v2927_v46  ;;  %v1429_v59 = vmul.f32 %v3254_v60, %v2687_v55  ;;  %1194 = vrot.lane.b32.xlu1 %v3206_v3, %s1971_s9  ;;  %v1075_v46 = vrot.slane %v4162_v58, 7 }
 0x15a   : > { %v3244_v63 = vpop.permute.xlu2 %920  ;;  %v1381_v44 = vadd.f32 %v1349_v11, %v2904_v2  ;;  %v1382_v48 = vadd.f32 %v1350_v38, %v2908_v37  ;;  %1192 = vrot.lane.b32.xlu0 %v3237_v51, %s1971_s9  ;;  %v3266_v2 = vld [vmem:[%s2037_s8 + $0xd8] sm:$0xff]  ;;  %v1418_v3 = vmul.f32 %v1910_v13, %v2687_v55  ;;  %v4172_v51 = vrot.slane %v4170_v18, 7 }
 0x15b   : > { %v995_v34 = vsel %vm934_vm4, %v3244_v63, %v4171_v40  ;;  %v1072_v37 = vrot.slane %v3266_v2, 7  ;;  %v1448_v43 = vadd.f32 %v1416_v6, %v1383_v49  ;;  %v3283_v6 = vsel %vm1031_vm3, %v4162_v58, %v1075_v46 }
 0x15c   : > { %v1024_v50 = vsel %vm2691_vm5, %v4171_v40, %v995_v34  ;;  %v1446_v11 = vadd.f32 %v1414_v8, %v1381_v44  ;;  %v1447_v38 = vadd.f32 %v1415_v1, %v1382_v48  ;;  %v1419_v40 = vmul.f32 %v1909_v53, %v2687_v55  ;;  %v901_v34 = vpop.permute.xlu1 %900  ;;  %4174 = vst [vmem:[#allocation7_spill] sm:$0xff] %v3283_v6  ;;  %v4175_v1 = vld [vmem:[#allocation55_spill] sm:$0xff] }
 0x15d   : > { %v1364_v39 = vmul.f32 %v2706_v24, %v1024_v50  ;;  %v899_v12 = vpop.permute.xlu0 %898  ;;  %v3279_v28 = vsel %vm1031_vm3, %v4170_v18, %v4172_v51  ;;  %v990_v53 = vsel %vm934_vm4, %v901_v34, %v4175_v1  ;;  %v4176_v51 = vld [vmem:[#allocation56_spill] sm:$0xff]  ;;  %v4177_v50 = vrot.slane %v4158_v16, 7 }
 0x15e   : > { %4173 = vst [vmem:[#allocation59_spill] sm:$0xff] %v3279_v28  ;;  %v942_v49 = vsel %vm934_vm4, %v899_v12, %v901_v34  ;;  %v3289_v13 = vadd.f32 %v1479_v30, %v1446_v11  ;;  %v1014_v44 = vsel %vm2691_vm5, %v4175_v1, %v990_v53  ;;  %v4179_v34 = vld [vmem:[#allocation27_spill] sm:$0xff]  ;;  %v4182_v16 = vld [vmem:[#allocation36_spill] sm:$0xff] }
 0x15f   : > { %v1396_v8 = vadd.f32 %v1364_v39, %v3164_v42  ;;  %v1013_v48 = vsel %vm2889_vm6, %v4176_v51, %v942_v49  ;;  %v3300_v42 = vadd.f32 %v3182_v41, %v1447_v38  ;;  %v3302_v39 = vadd.f32 %v1481_v0, %v1448_v43  ;;  %v1911_v38 = vld [vmem:[%s2037_s8 + $0x90] sm:$0xff]  ;;  %v4180_v0 = vld [vmem:[#allocation34_spill] sm:$0xff] }
 0x160   : > { %1202 = vrot.lane.b32.xlu2 %v3283_v6, %s1971_s9  ;;  %v1354_v58 = vmul.f32 %v2706_v24, %v1014_v44  ;;  %v1353_v30 = vmul.f32 %v2706_v24, %v1013_v48  ;;  %v3309_v11 = vsel %vm1031_vm3, %v4177_v50, %v1072_v37  ;;  %v1323_v1 = vmul.f32 %v2704_v27, %v4179_v34  ;;  %v4184_v48 = vld [vmem:[#allocation39_spill] sm:$0xff] }
 0x161   : > { %v1461_v12 = vadd.f32 %v1429_v59, %v1396_v8  ;;  %4178 = vst [vmem:[#allocation5_spill] sm:$0xff] %v3309_v11  ;;  %v1324_v41 = vmul.f32 %v2704_v27, %v3160_v35  ;;  %v3318_v59 = vsel %vm555_vm0, %v1911_v38, %v4180_v0  ;;  %v4181_v8 = vld [vmem:[#allocation20_spill] sm:$0xff]  ;;  %v3325_v37 = vmul.f32 %v2704_v27, %v4182_v16  ;;  %v1912_v35 = vld [vmem:[%s2037_s8 + $0xa0] sm:$0xff] }
 0x162   : > { %v3320_v43 = vpop.permute.xlu2 %926  ;;  %v1078_v53 = vrot.slane %v4181_v8, 7  ;;  %v1386_v49 = vadd.f32 %v1354_v58, %v2956_v47  ;;  %v1385_v44 = vadd.f32 %v1353_v30, %v2874_v17  ;;  %v3334_v50 = vsel %vm555_vm0, %v1912_v35, %v4184_v48  ;;  %v4185_v0 = vld [vmem:[#allocation73_spill] sm:$0xff]  ;;  %1200 = vrot.lane.b32.xlu1 %v3279_v28, %s1971_s9  ;;  %1198 = vrot.lane.b32.xlu0 %v3309_v11, %s1971_s9  ;;  %v3345_v17 = vld [vmem:[%s2037_s8 + $0xa8] sm:$0xff]  ;;  %v4186_v47 = vld [vmem:[#allocation79_spill] sm:$0xff] }
 0x163   : > { %v3329_v51 = vadd.f32 %v1494_v26, %v1461_v12  ;;  %v1484_v34 = vmul.f32 %v2715_v57, %v3175_v20  ;;  %v1483_v8 = vmul.f32 %v2715_v57, %v4185_v0  ;;  %v749_v26 = vsel %vm692_vm2, %v4186_v47, %v3345_v17  ;;  %v4187_v30 = vld [vmem:[#allocation23_spill] sm:$0xff]  ;;  %v1914_v0 = vld [vmem:[%s2037_s8 + $0x80] sm:$0xff]  ;;  %v1915_v28 = vld [vmem:[%s2037_s8 + $0x88] sm:$0xff] }
 0x164   : > { %v1451_v12 = vadd.f32 %v1419_v40, %v1386_v49  ;;  %v1450_v58 = vadd.f32 %v1418_v3, %v1385_v44  ;;  %v1076_v16 = vrot.slane %v4187_v30, 7  ;;  %v1422_v20 = vmul.f32 %v1911_v38, %v2687_v55  ;;  %v907_v48 = vpop.permute.xlu1 %906  ;;  %v4189_v40 = vld [vmem:[#allocation61_spill] sm:$0xff]  ;;  %v4190_v44 = vld [vmem:[#allocation60_spill] sm:$0xff] }
 0x165   : > { %4183 = vst [vmem:[#allocation9_spill] sm:$0xff] %v3329_v51  ;;  %v1420_v6 = vmul.f32 %v1914_v0, %v2687_v55  ;;  %v1421_v51 = vmul.f32 %v1915_v28, %v2687_v55  ;;  %v905_v11 = vpop.permute.xlu0 %904  ;;  %v3357_v56 = vsel %vm1031_vm3, %v1075_v46, %v1078_v53  ;;  %v944_v47 = vsel %vm934_vm4, %v907_v48, %v3101_v31  ;;  %v4191_v28 = vld [vmem:[#allocation53_spill] sm:$0xff]  ;;  %v4194_v0 = vld [vmem:[#allocation50_spill] sm:$0xff] }
 0x166   : > { %4188 = vst [vmem:[#allocation12_spill] sm:$0xff] %v3357_v56  ;;  %v943_v3 = vsel %vm934_vm4, %v3032_v23, %v905_v11  ;;  %v991_v38 = vsel %vm934_vm4, %v905_v11, %v4189_v40  ;;  %v3365_v49 = vadd.f32 %v1483_v8, %v1450_v58  ;;  %v1017_v30 = vsel %vm2889_vm6, %v4190_v44, %v944_v47 }
 0x167   : > { %v1015_v46 = vsel %vm2889_vm6, %v4191_v28, %v943_v3  ;;  %v1016_v31 = vsel %vm2691_vm5, %v4189_v40, %v991_v38  ;;  %v3376_v53 = vadd.f32 %v1484_v34, %v1451_v12  ;;  %v1357_v23 = vmul.f32 %v2706_v24, %v1017_v30  ;;  %v4195_v3 = vld [vmem:[#allocation66_spill] sm:$0xff]  ;;  %v4196_v40 = vld [vmem:[#allocation32_spill] sm:$0xff] }
 0x168   : > { %v1355_v11 = vmul.f32 %v2706_v24, %v1015_v46  ;;  %v1356_v8 = vmul.f32 %v2706_v24, %v1016_v31  ;;  %v4192_v58 = vrot.slane %v4170_v18, 7  ;;  %v1337_v47 = vmul.f32 %v2704_v27, %v4194_v0  ;;  %v4197_v28 = vld [vmem:[#allocation78_spill] sm:$0xff]  ;;  %v4198_v31 = vld [vmem:[#allocation80_spill] sm:$0xff] }
 0x169   : > { %v751_v34 = vsel %vm692_vm2, %v4195_v3, %v3254_v60  ;;  %v1486_v12 = vmul.f32 %v2715_v57, %v749_v26  ;;  %v756_v38 = vsel %vm692_vm2, %v2910_v21, %v4196_v40  ;;  %v1389_v18 = vadd.f32 %v1357_v23, %v1324_v41  ;;  %v3406_v26 = vld [vmem:[%s2037_s8 + $0xf8] sm:$0xff] }
 0x16a   : > { %v3384_v48 = vsel %vm1031_vm3, %v4192_v58, %v1076_v16  ;;  %v3395_v44 = vpop.permute.xlu2 %932  ;;  %v1387_v16 = vadd.f32 %v1355_v11, %v2952_v61  ;;  %v1388_v30 = vadd.f32 %v1356_v8, %v1323_v1  ;;  %v1485_v60 = vmul.f32 %v2715_v57, %v4198_v31  ;;  %1206 = vrot.lane.b32.xlu1 %v3357_v56, %s1971_s9  ;;  %v4199_v11 = vld [vmem:[#allocation86_spill] sm:$0xff]  ;;  %v4200_v31 = vld [vmem:[#allocation64_spill] sm:$0xff] }
 0x16b   : > { %4193 = vst [vmem:[#allocation42_spill] sm:$0xff] %v3384_v48  ;;  %v998_v46 = vsel %vm934_vm4, %v3395_v44, %v4197_v28  ;;  %v1435_v21 = vmul.f32 %v3406_v26, %v2687_v55  ;;  %1204 = vrot.lane.b32.xlu0 %v3384_v48, %s1971_s9  ;;  %v1454_v61 = vadd.f32 %v1422_v20, %v1389_v18  ;;  %v4201_v18 = vld [vmem:[#allocation65_spill] sm:$0xff] }
 0x16c   : > { %v1030_v58 = vsel %vm2691_vm5, %v4197_v28, %v998_v46  ;;  %v1452_v1 = vadd.f32 %v1420_v6, %v1387_v16  ;;  %v1453_v41 = vadd.f32 %v1421_v51, %v1388_v30  ;;  %v1487_v8 = vmul.f32 %v2715_v57, %v4199_v11  ;;  %v913_v3 = vpop.permute.xlu1 %912 }
 0x16d   : > { %v1370_v23 = vmul.f32 %v2706_v24, %v1030_v58  ;;  %v1500_v0 = vmul.f32 %v2715_v57, %v756_v38  ;;  %v1424_v40 = vmul.f32 %v1912_v35, %v2687_v55  ;;  %v911_v28 = vpop.permute.xlu0 %910  ;;  %v993_v56 = vsel %vm934_vm4, %v913_v3, %v4200_v31 }
 0x16e   : > { %v945_v6 = vsel %vm934_vm4, %v911_v28, %v913_v3  ;;  %v3425_v51 = vadd.f32 %v1485_v60, %v1452_v1  ;;  %v1020_v20 = vsel %vm2691_vm5, %v4200_v31, %v993_v56  ;;  %v3433_v35 = vadd.f32 %v1486_v12, %v1453_v41 }
 0x16f   : > { %v1402_v46 = vadd.f32 %v1370_v23, %v1337_v47  ;;  %v1019_v38 = vsel %vm2889_vm6, %v4201_v18, %v945_v6  ;;  %v3435_v16 = vadd.f32 %v1487_v8, %v1454_v61  ;;  %v1360_v30 = vmul.f32 %v2706_v24, %v1020_v20  ;;  %v4205_v23 = vld [vmem:[#allocation14_spill] sm:$0xff]  ;;  %v4206_v8 = vld [vmem:[#allocation83_spill] sm:$0xff]  ;;  %v4209_v6 = vld [vmem:[#allocation85_spill] sm:$0xff] }
 0x170   : > { %v1359_v58 = vmul.f32 %v2706_v24, %v1019_v38  ;;  %v4202_v60 = vperm.slane %v2663_v5, 0  ;;  %v1328_v56 = vmul.f32 %v2704_v27, %v3318_v59  ;;  %v1425_v12 = vmul.f32 %v3345_v17, %v2687_v55  ;;  %v4208_v59 = vld [vmem:[#allocation35_spill] sm:$0xff]  ;;  %v4210_v18 = vld [vmem:[#allocation90_spill] sm:$0xff] }
 0x171   : > { %v1467_v47 = vadd.f32 %v1435_v21, %v1402_v46  ;;  %v3450_v41 = vstv %s3397_s10  ;;  %v1392_v21 = vadd.f32 %v1360_v30, %v3325_v37  ;;  %v1329_v46 = vmul.f32 %v2704_v27, %v4208_v59 }
 0x172   : > { %vm3441_vm8 = vcmp.eq.s32.totalorder %v4202_v60, 0  ;;  %v3452_v61 = vpop.permute.xlu2 %1148  ;;  %v1391_v11 = vadd.f32 %v1359_v58, %v4205_v23  ;;  %v1330_v17 = vmul.f32 %v2704_v27, %v3334_v50  ;;  %v1490_v31 = vmul.f32 %v2715_v57, %v751_v34  ;;  %v1917_v58 = vld [vmem:[%s2037_s8 + $0xb0] sm:$0xff]  ;;  %v1918_v23 = vld [vmem:[%s2037_s8 + $0xb8] sm:$0xff] }
 0x173   : > { %v1258_v3 = vsel %vm1208_vm7, %v4206_v8, %v3452_v61  ;;  %v3459_v28 = vadd.f32 %v1500_v0, %v1467_v47  ;;  %v1489_v20 = vmul.f32 %v2715_v57, %v4209_v6  ;;  %v752_v0 = vsel %vm692_vm2, %v4210_v18, %v3266_v2 }
 0x174   : > { %v1275_v37 = vsel %vm3441_vm8, %v4206_v8, %v1258_v3  ;;  %v1456_v38 = vadd.f32 %v1424_v40, %v1391_v11  ;;  %v1457_v30 = vadd.f32 %v1425_v12, %v1392_v21  ;;  %v1428_v50 = vmul.f32 %v3233_v19, %v2687_v55  ;;  %v919_v34 = vpop.permute.xlu1 %918  ;;  %v4211_v12 = vld [vmem:[#allocation71_spill] sm:$0xff]  ;;  %v4212_v11 = vld [vmem:[#allocation70_spill] sm:$0xff] }
 0x175   : > { %4207 = vst [vmem:[#allocation41_spill] sm:$0xff] %v3459_v28  ;;  %v1536_v47 = vmul.f32 %v3450_v41, %v1275_v37  ;;  %v1426_v60 = vmul.f32 %v1917_v58, %v2687_v55  ;;  %v1427_v8 = vmul.f32 %v1918_v23, %v2687_v55  ;;  %v917_v3 = vpop.permute.xlu0 %916  ;;  %v947_v6 = vsel %vm934_vm4, %v919_v34, %v3244_v63  ;;  %v4213_v37 = vld [vmem:[#allocation62_spill] sm:$0xff] }
 0x176   : > { %v946_v40 = vsel %vm934_vm4, %v3167_v15, %v917_v3  ;;  %v994_v21 = vsel %vm934_vm4, %v917_v3, %v4211_v12  ;;  %v3504_v18 = vadd.f32 %v1489_v20, %v1456_v38  ;;  %v1492_v20 = vmul.f32 %v2715_v57, %v752_v0  ;;  %v4215_v38 = vld [vmem:[#allocation91_spill] sm:$0xff] }
 0x177   : > { %v1568_v59 = vadd.f32 %v1536_v47, %v3071_v29  ;;  %v1023_v29 = vsel %vm2889_vm6, %v4212_v11, %v947_v6  ;;  %v1021_v63 = vsel %vm2889_vm6, %v4213_v37, %v946_v40  ;;  %v1022_v15 = vsel %vm2691_vm5, %v4211_v12, %v994_v21  ;;  %v4214_v11 = vld [vmem:[#allocation25_spill] sm:$0xff] }
 0x178   : > { %v1363_v34 = vmul.f32 %v2706_v24, %v1023_v29  ;;  %v1361_v23 = vmul.f32 %v2706_v24, %v1021_v63  ;;  %v1362_v3 = vmul.f32 %v2706_v24, %v1022_v15  ;;  %v3511_v6 = vadd.f32 %v1490_v31, %v1457_v30  ;;  %v4216_v31 = vld [vmem:[#allocation44_spill] sm:$0xff] }
 0x179   : > { %v1600_v47 = vmax.f32 %v1568_v59, 0.0  ;;  %v617_v40 = vsel %vm555_vm0, %v1917_v58, %v4214_v11  ;;  %v1491_v59 = vmul.f32 %v2715_v57, %v4215_v38  ;;  %v618_v30 = vsel %vm555_vm0, %v3233_v19, %v4216_v31  ;;  %v4217_v58 = vld [vmem:[#allocation46_spill] sm:$0xff]  ;;  %v4222_v38 = vld [vmem:[#allocation77_spill] sm:$0xff] }
 0x17a   : > { %v3509_v28 = vpop.permute.xlu2 %1154  ;;  %v1395_v37 = vadd.f32 %v1363_v34, %v1330_v17  ;;  %v1393_v48 = vadd.f32 %v1361_v23, %v1328_v56  ;;  %v1394_v12 = vadd.f32 %v1362_v3, %v1329_v46  ;;  %v1332_v15 = vmul.f32 %v2704_v27, %v617_v40  ;;  %v4218_v56 = vld [vmem:[#allocation97_spill] sm:$0xff]  ;;  %v4219_v34 = vld [vmem:[#allocation75_spill] sm:$0xff]  ;;  %v4221_v40 = vld [vmem:[#allocation76_spill] sm:$0xff] }
 0x17b   : > { %1632 = vst [vmem:[%s3493_s13 + $0x10] sm:$0xff] %v1600_v47  ;;  %v1333_v17 = vmul.f32 %v2704_v27, %v4217_v58  ;;  %v1493_v46 = vmul.f32 %v2715_v57, %v4218_v56  ;;  %v4220_v3 = vld [vmem:[#allocation49_spill] sm:$0xff]  ;;  %v1431_v31 = vmul.f32 %v3266_v2, %v2687_v55 }
 0x17c   : > { %v1460_v21 = vadd.f32 %v1428_v50, %v1395_v37  ;;  %v1458_v29 = vadd.f32 %v1426_v60, %v1393_v48  ;;  %v1459_v63 = vadd.f32 %v1427_v8, %v1394_v12  ;;  %v925_v47 = vpop.permute.xlu1 %924  ;;  %v1919_v8 = vld [vmem:[%s2037_s8 + $0xd0] sm:$0xff] }
 0x17d   : > { %v923_v0 = vpop.permute.xlu0 %922  ;;  %v996_v23 = vsel %vm934_vm4, %v925_v47, %v4219_v34  ;;  %v619_v19 = vsel %vm555_vm0, %v1919_v8, %v4220_v3 }
 0x17e   : > { %v948_v48 = vsel %vm934_vm4, %v923_v0, %v925_v47  ;;  %v3530_v50 = vadd.f32 %v1491_v59, %v1458_v29  ;;  %v3532_v60 = vadd.f32 %v1492_v20, %v1459_v63  ;;  %v1026_v11 = vsel %vm2691_vm5, %v4219_v34, %v996_v23  ;;  %v4223_v47 = vld [vmem:[#allocation95_spill] sm:$0xff]  ;;  %v4224_v0 = vld [vmem:[#allocation45_spill] sm:$0xff] }
 0x17f   : > { %v1025_v37 = vsel %vm2889_vm6, %v4221_v40, %v948_v48  ;;  %v3543_v12 = vadd.f32 %v1493_v46, %v1460_v21  ;;  %v754_v20 = vsel %vm692_vm2, %v4222_v38, %v3406_v26  ;;  %v1366_v59 = vmul.f32 %v2706_v24, %v1026_v11  ;;  %v1921_v38 = vld [vmem:[%s2037_s8 + $0xf0] sm:$0xff] }
 0x180   : > { %v1430_v29 = vmul.f32 %v1919_v8, %v2687_v55  ;;  %v1365_v63 = vmul.f32 %v2706_v24, %v1025_v37  ;;  %v1334_v21 = vmul.f32 %v2704_v27, %v618_v30  ;;  %v1335_v34 = vmul.f32 %v2704_v27, %v4224_v0  ;;  %v4225_v30 = vld [vmem:[#allocation96_spill] sm:$0xff]  ;;  %v4226_v8 = vld [vmem:[#allocation101_spill] sm:$0xff] }
 0x181   : > { %v1398_v56 = vadd.f32 %v1366_v59, %v1333_v17  ;;  %v1336_v23 = vmul.f32 %v2704_v27, %v619_v19  ;;  %v1496_v2 = vmul.f32 %v2715_v57, %v754_v20  ;;  %v1495_v17 = vmul.f32 %v2715_v57, %v4225_v30  ;;  %v1922_v20 = vld [vmem:[%s2037_s8 + $0xe0] sm:$0xff] }
 0x182   : > { %v3553_v58 = vpop.permute.xlu2 %1160  ;;  %v1397_v46 = vadd.f32 %v1365_v63, %v1332_v15  ;;  %v1920_v15 = vld [vmem:[%s2316_s23 + $0x8] sm:$0xff]  ;;  %v1434_v27 = vmul.f32 %v1921_v38, %v2687_v55  ;;  %v1432_v59 = vmul.f32 %v1922_v20, %v2687_v55 }
 0x183   : > { %v1261_v26 = vsel %vm1208_vm7, %v4223_v47, %v3553_v58  ;;  %v755_v3 = vsel %vm692_vm2, %v4226_v8, %v1920_v15  ;;  %v1463_v37 = vadd.f32 %v1431_v31, %v1398_v56  ;;  %v1923_v63 = vld [vmem:[%s2037_s8 + $0xe8] sm:$0xff]  ;;  %v4229_v15 = vld [vmem:[#allocation72_spill] sm:$0xff] }
 0x184   : > { %v1281_v48 = vsel %vm3441_vm8, %v4223_v47, %v1261_v26  ;;  %v1462_v11 = vadd.f32 %v1430_v29, %v1397_v46  ;;  %v931_v19 = vpop.permute.xlu1 %930  ;;  %v1433_v47 = vmul.f32 %v1923_v63, %v2687_v55  ;;  %v4227_v56 = vld [vmem:[#allocation82_spill] sm:$0xff]  ;;  %v1498_v45 = vmul.f32 %v2715_v57, %v755_v3  ;;  %v4235_v3 = vld [vmem:[#allocation88_spill] sm:$0xff] }
 0x185   : > { %v1542_v40 = vmul.f32 %v3450_v41, %v1281_v48  ;;  %v929_v26 = vpop.permute.xlu0 %928  ;;  %v950_v29 = vsel %vm934_vm4, %v931_v19, %v3395_v44  ;;  %v4228_v48 = vld [vmem:[#allocation81_spill] sm:$0xff]  ;;  %v3601_v20 = vadd.f32 %v1496_v2, %v1463_v37 }
 0x186   : > { %v949_v31 = vsel %vm934_vm4, %v3320_v43, %v929_v26  ;;  %v997_v46 = vsel %vm934_vm4, %v929_v26, %v4227_v56  ;;  %v1029_v30 = vsel %vm2889_vm6, %v4228_v48, %v950_v29  ;;  %v3594_v8 = vadd.f32 %v1495_v17, %v1462_v11  ;;  %v4230_v29 = vld [vmem:[#allocation102_spill] sm:$0xff]  ;;  %v4234_v2 = vld [vmem:[#allocation21_spill] sm:$0xff] }
 0x187   : > { %v1574_v0 = vadd.f32 %v1542_v40, %v3214_v52  ;;  %v1027_v55 = vsel %vm2889_vm6, %v4229_v15, %v949_v31  ;;  %v1028_v52 = vsel %vm2691_vm5, %v4227_v56, %v997_v46  ;;  %v1369_v43 = vmul.f32 %v2706_v24, %v1029_v30 }
 0x188   : > { %v1367_v40 = vmul.f32 %v2706_v24, %v1027_v55  ;;  %v1368_v38 = vmul.f32 %v2706_v24, %v1028_v52  ;;  %v1497_v17 = vmul.f32 %v2715_v57, %v4230_v29  ;;  %v4231_v56 = vperm.slane %v2663_v5, 1 }
 0x189   : > { %v1606_v44 = vmax.f32 %v1574_v0, 0.0  ;;  %v1401_v22 = vadd.f32 %v1369_v43, %v1336_v23  ;;  %v1499_v37 = vmul.f32 %v2715_v57, %v4234_v2 }
 0x18a   : > { %v3599_v19 = vpop.permute.xlu2 %1166  ;;  %v1399_v63 = vadd.f32 %v1367_v40, %v1334_v21  ;;  %v1400_v26 = vadd.f32 %v1368_v38, %v1335_v34  ;;  %vm3609_vm9 = vcmp.eq.s32.totalorder %v4231_v56, 0  ;;  %v4238_v40 = vld [vmem:[#allocation17_spill] sm:$0xff] }
 0x18b   : > { %1638 = vst [vmem:[%s3493_s13 + $0x40] sm:$0xff] %v1606_v44  ;;  %v1466_v11 = vadd.f32 %v1434_v27, %v1401_v22  ;;  %v4237_v44 = vld [vmem:[#allocation94_spill] sm:$0xff] }
 0x18c   : > { %v1464_v0 = vadd.f32 %v1432_v59, %v1399_v63  ;;  %v1465_v31 = vadd.f32 %v1433_v47, %v1400_v26  ;;  %v1147_v23 = vpop.permute.xlu1 %1146  ;;  %v4236_v59 = vld [vmem:[#allocation87_spill] sm:$0xff] }
 0x18d   : > { %v1145_v21 = vpop.permute.xlu0 %1144  ;;  %v3628_v47 = vadd.f32 %v1499_v37, %v1466_v11  ;;  %v4240_v37 = vld [vmem:[#allocation89_spill] sm:$0xff] }
 0x18e   : > { %v1209_v34 = vsel %vm1208_vm7, %v1145_v21, %v1147_v23  ;;  %v1257_v46 = vsel %vm1208_vm7, %v4235_v3, %v1145_v21  ;;  %v3618_v48 = vadd.f32 %v1497_v17, %v1464_v0  ;;  %v3620_v27 = vadd.f32 %v1498_v45, %v1465_v31  ;;  %v4239_v0 = vld [vmem:[#allocation92_spill] sm:$0xff]  ;;  %v4241_v21 = vld [vmem:[#allocation93_spill] sm:$0xff] }
 0x18f   : > { %v1273_v5 = vsel %vm3441_vm8, %v4235_v3, %v1257_v46  ;;  %v1274_v57 = vsel %vm3609_vm9, %v4236_v59, %v1209_v34 }
 0x190   : > { %v1534_v30 = vmul.f32 %v3450_v41, %v1273_v5  ;;  %v1535_v15 = vmul.f32 %v3450_v41, %v1274_v57 }
 0x192   : > { %v3632_v55 = vpop.permute.xlu2 %1172  ;;  %v1566_v52 = vadd.f32 %v1534_v30, %v3002_v54  ;;  %v1567_v43 = vadd.f32 %v1535_v15, %v4237_v44 }
 0x193   : > { %v1264_v38 = vsel %vm1208_vm7, %v4238_v40, %v3632_v55 }
 0x194   : > { %v1287_v22 = vsel %vm3441_vm8, %v4238_v40, %v1264_v38  ;;  %v1598_v63 = vmax.f32 %v1566_v52, 0.0  ;;  %v1599_v26 = vmax.f32 %v1567_v43, 0.0  ;;  %v1153_v29 = vpop.permute.xlu1 %1152  ;;  %v4242_v38 = vld [vmem:[#allocation99_spill] sm:$0xff] }
 0x195   : > { %v1548_v45 = vmul.f32 %v3450_v41, %v1287_v22  ;;  %v1151_v17 = vpop.permute.xlu0 %1150  ;;  %v1211_v11 = vsel %vm1208_vm7, %v1153_v29, %v3509_v28  ;;  %v1259_v31 = vsel %vm1208_vm7, %v4239_v0, %v1153_v29 }
 0x196   : > { %1630 = vst [vmem:[%s3493_s13] sm:$0xff] %v1598_v63  ;;  %v1210_v56 = vsel %vm1208_vm7, %v3452_v61, %v1151_v17  ;;  %v1277_v2 = vsel %vm3441_vm8, %v4239_v0, %v1259_v31  ;;  %v1278_v23 = vsel %vm3609_vm9, %v4240_v37, %v1211_v11  ;;  %v4244_v17 = vld [vmem:[#allocation15_spill] sm:$0xff] }
 0x197   : > { %v1580_v54 = vadd.f32 %v1548_v45, %v3365_v49  ;;  %1631 = vst [vmem:[%s3493_s13 + $0x8] sm:$0xff] %v1599_v26  ;;  %v1276_v49 = vsel %vm3609_vm9, %v4241_v21, %v1210_v56  ;;  %v1538_v34 = vmul.f32 %v3450_v41, %v1277_v2  ;;  %v1539_v61 = vmul.f32 %v3450_v41, %v1278_v23 }
 0x198   : > { %v1537_v3 = vmul.f32 %v3450_v41, %v1276_v49  ;;  %v4245_v49 = vld [vmem:[#allocation103_spill] sm:$0xff] }
 0x199   : > { %v1612_v28 = vmax.f32 %v1580_v54, 0.0  ;;  %v1570_v5 = vadd.f32 %v1538_v34, %v3139_v14  ;;  %v1571_v59 = vadd.f32 %v1539_v61, %v3150_v32  ;;  %v4243_v32 = vld [vmem:[#allocation98_spill] sm:$0xff]  ;;  %v4246_v61 = vld [vmem:[#allocation100_spill] sm:$0xff] }
 0x19a   : > { %v3664_v46 = vpop.permute.xlu2 %1178  ;;  %v1569_v57 = vadd.f32 %v1537_v3, %v3085_v25 }
 0x19b   : > { %1644 = vst [vmem:[%s3493_s13 + $0x70] sm:$0xff] %v1612_v28  ;;  %v1602_v30 = vmax.f32 %v1570_v5, 0.0  ;;  %v1603_v15 = vmax.f32 %v1571_v59, 0.0  ;;  %v4247_v5 = vld [vmem:[#allocation104_spill] sm:$0xff] }
 0x19c   : > { %v1601_v52 = vmax.f32 %v1569_v57, 0.0  ;;  %v1159_v44 = vpop.permute.xlu1 %1158 }
 0x19d   : > { %v1157_v43 = vpop.permute.xlu0 %1156  ;;  %1634 = vst [vmem:[%s3493_s13 + $0x20] sm:$0xff] %v1602_v30 }
 0x19e   : > { %v1212_v40 = vsel %vm1208_vm7, %v1157_v43, %v1159_v44  ;;  %v1260_v22 = vsel %vm1208_vm7, %v4242_v38, %v1157_v43  ;;  %1635 = vst [vmem:[%s3493_s13 + $0x28] sm:$0xff] %v1603_v15 }
 0x19f   : > { %v1279_v14 = vsel %vm3441_vm8, %v4242_v38, %v1260_v22  ;;  %v1280_v25 = vsel %vm3609_vm9, %v4243_v32, %v1212_v40  ;;  %1633 = vst [vmem:[%s3493_s13 + $0x18] sm:$0xff] %v1601_v52 }
 0x1a0   : > { %v1540_v63 = vmul.f32 %v3450_v41, %v1279_v14  ;;  %v1541_v26 = vmul.f32 %v3450_v41, %v1280_v25  ;;  %v4248_v25 = vld [vmem:[#allocation19_spill] sm:$0xff] }
 0x1a2   : > { %v3684_v45 = vpop.permute.xlu2 %1184  ;;  %v1572_v29 = vadd.f32 %v1540_v63, %v3152_v33  ;;  %v1573_v54 = vadd.f32 %v1541_v26, %v4244_v17 }
 0x1a3   : > { %v1267_v11 = vsel %vm1208_vm7, %v3053_v4, %v3684_v45 }
 0x1a4   : > { %v1293_v0 = vsel %vm3441_vm8, %v3053_v4, %v1267_v11  ;;  %v1604_v31 = vmax.f32 %v1572_v29, 0.0  ;;  %v1605_v56 = vmax.f32 %v1573_v54, 0.0  ;;  %v1165_v37 = vpop.permute.xlu1 %1164 }
 0x1a5   : > { %v1554_v2 = vmul.f32 %v3450_v41, %v1293_v0  ;;  %v1163_v23 = vpop.permute.xlu0 %1162  ;;  %v1214_v21 = vsel %vm1208_vm7, %v1165_v37, %v3599_v19  ;;  %v1262_v28 = vsel %vm1208_vm7, %v4245_v49, %v1165_v37 }
 0x1a6   : > { %1636 = vst [vmem:[%s3493_s13 + $0x30] sm:$0xff] %v1604_v31  ;;  %v1213_v34 = vsel %vm1208_vm7, %v3553_v58, %v1163_v23  ;;  %v1283_v4 = vsel %vm3441_vm8, %v4245_v49, %v1262_v28  ;;  %v1284_v3 = vsel %vm3609_vm9, %v4246_v61, %v1214_v21  ;;  %v4250_v21 = vld [vmem:[#allocation31_spill] sm:$0xff] }
 0x1a7   : > { %v1586_v33 = vadd.f32 %v1554_v2, %v3504_v18  ;;  %1637 = vst [vmem:[%s3493_s13 + $0x38] sm:$0xff] %v1605_v56  ;;  %v1282_v18 = vsel %vm3609_vm9, %v4247_v5, %v1213_v34  ;;  %v1544_v59 = vmul.f32 %v3450_v41, %v1283_v4  ;;  %v1545_v58 = vmul.f32 %v3450_v41, %v1284_v3  ;;  %v4251_v34 = vld [vmem:[#allocation26_spill] sm:$0xff] }
 0x1a8   : > { %v1543_v57 = vmul.f32 %v3450_v41, %v1282_v18 }
 0x1a9   : > { %v1618_v19 = vmax.f32 %v1586_v33, 0.0  ;;  %v1576_v15 = vadd.f32 %v1544_v59, %v3289_v13  ;;  %v1577_v52 = vadd.f32 %v1545_v58, %v3300_v42  ;;  %v4249_v42 = vld [vmem:[#allocation18_spill] sm:$0xff] }
 0x1aa   : > { %v3716_v30 = vpop.permute.xlu2 %1190  ;;  %v1575_v44 = vadd.f32 %v1543_v57, %v3227_v36 }
 0x1ab   : > { %1650 = vst [vmem:[%s3493_s13 + $0xa0] sm:$0xff] %v1618_v19  ;;  %v1608_v43 = vmax.f32 %v1576_v15, 0.0  ;;  %v1609_v40 = vmax.f32 %v1577_v52, 0.0 }
 0x1ac   : > { %v1607_v38 = vmax.f32 %v1575_v44, 0.0  ;;  %v1171_v22 = vpop.permute.xlu1 %1170 }
 0x1ad   : > { %v1169_v14 = vpop.permute.xlu0 %1168  ;;  %1640 = vst [vmem:[%s3493_s13 + $0x50] sm:$0xff] %v1608_v43 }
 0x1ae   : > { %v1215_v32 = vsel %vm1208_vm7, %v1169_v14, %v1171_v22  ;;  %v1263_v63 = vsel %vm1208_vm7, %v4248_v25, %v1169_v14  ;;  %1641 = vst [vmem:[%s3493_s13 + $0x58] sm:$0xff] %v1609_v40  ;;  %v4253_v14 = vld [vmem:[#allocation38_spill] sm:$0xff] }
 0x1af   : > { %v1285_v13 = vsel %vm3441_vm8, %v4248_v25, %v1263_v63  ;;  %v1286_v36 = vsel %vm3609_vm9, %v4249_v42, %v1215_v32  ;;  %1639 = vst [vmem:[%s3493_s13 + $0x48] sm:$0xff] %v1607_v38 }
 0x1b0   : > { %v1546_v26 = vmul.f32 %v3450_v41, %v1285_v13  ;;  %v1547_v29 = vmul.f32 %v3450_v41, %v1286_v36  ;;  %v4254_v36 = vld [vmem:[#allocation30_spill] sm:$0xff] }
 0x1b2   : > { %v3736_v17 = vpop.permute.xlu2 %1196  ;;  %v1578_v54 = vadd.f32 %v1546_v26, %v3302_v39  ;;  %v1579_v11 = vadd.f32 %v1547_v29, %v3039_v7  ;;  %v4255_v29 = vld [vmem:[#allocation28_spill] sm:$0xff] }
 0x1b3   : > { %v1270_v0 = vsel %vm1208_vm7, %v3194_v9, %v3736_v17 }
 0x1b4   : > { %v1299_v31 = vsel %vm3441_vm8, %v3194_v9, %v1270_v0  ;;  %v1610_v56 = vmax.f32 %v1578_v54, 0.0  ;;  %v1611_v2 = vmax.f32 %v1579_v11, 0.0  ;;  %v1177_v23 = vpop.permute.xlu1 %1176  ;;  %v4256_v11 = vld [vmem:[#allocation37_spill] sm:$0xff] }
 0x1b5   : > { %v1560_v37 = vmul.f32 %v3450_v41, %v1299_v31  ;;  %v1175_v33 = vpop.permute.xlu0 %1174  ;;  %v1217_v7 = vsel %vm1208_vm7, %v1177_v23, %v3664_v46  ;;  %v1265_v49 = vsel %vm1208_vm7, %v4250_v21, %v1177_v23 }
 0x1b6   : > { %1642 = vst [vmem:[%s3493_s13 + $0x60] sm:$0xff] %v1610_v56  ;;  %v1216_v28 = vsel %vm1208_vm7, %v3632_v55, %v1175_v33  ;;  %v1289_v9 = vsel %vm3441_vm8, %v4250_v21, %v1265_v49  ;;  %v1290_v4 = vsel %vm3609_vm9, %v4251_v34, %v1217_v7 }
 0x1b7   : > { %v1592_v39 = vadd.f32 %v1560_v37, %v3594_v8  ;;  %1643 = vst [vmem:[%s3493_s13 + $0x68] sm:$0xff] %v1611_v2  ;;  %v4252_v8 = vld [vmem:[#allocation22_spill] sm:$0xff]  ;;  %v1550_v3 = vmul.f32 %v3450_v41, %v1289_v9  ;;  %v1551_v55 = vmul.f32 %v3450_v41, %v1290_v4 }
 0x1b8   : > { %v1288_v46 = vsel %vm3609_vm9, %v4252_v8, %v1216_v28  ;;  %v4257_v28 = vld [vmem:[#allocation6_spill] sm:$0xff] }
 0x1b9   : > { %v1624_v61 = vmax.f32 %v1592_v39, 0.0  ;;  %v1549_v5 = vmul.f32 %v3450_v41, %v1288_v46  ;;  %v1582_v18 = vadd.f32 %v1550_v3, %v3425_v51  ;;  %v1583_v19 = vadd.f32 %v1551_v55, %v3433_v35  ;;  %v4259_v46 = vld [vmem:[#allocation9_spill] sm:$0xff] }
 0x1ba   : > { %v1203_v3 = vpop.permute.xlu2 %1202 }
 0x1bb   : > { %1656 = vst [vmem:[%s3493_s13 + $0xd0] sm:$0xff] %v1624_v61  ;;  %v1581_v59 = vadd.f32 %v1549_v5, %v3376_v53  ;;  %v1614_v58 = vmax.f32 %v1582_v18, 0.0  ;;  %v1615_v57 = vmax.f32 %v1583_v19, 0.0 }
 0x1bc   : > { %v1183_v52 = vpop.permute.xlu1 %1182 }
 0x1bd   : > { %v1613_v15 = vmax.f32 %v1581_v59, 0.0  ;;  %v1181_v44 = vpop.permute.xlu0 %1180  ;;  %1646 = vst [vmem:[%s3493_s13 + $0x80] sm:$0xff] %v1614_v58  ;;  %v4260_v58 = vld [vmem:[#allocation59_spill] sm:$0xff] }
 0x1be   : > { %v1218_v43 = vsel %vm1208_vm7, %v1181_v44, %v1183_v52  ;;  %v1266_v40 = vsel %vm1208_vm7, %v3091_v62, %v1181_v44  ;;  %1647 = vst [vmem:[%s3493_s13 + $0x88] sm:$0xff] %v1615_v57  ;;  %v4261_v52 = vld [vmem:[#allocation7_spill] sm:$0xff] }
 0x1bf   : > { %v1291_v51 = vsel %vm3441_vm8, %v3091_v62, %v1266_v40  ;;  %v1292_v53 = vsel %vm3609_vm9, %v3061_v10, %v1218_v43  ;;  %1645 = vst [vmem:[%s3493_s13 + $0x78] sm:$0xff] %v1613_v15  ;;  %v4262_v43 = vld [vmem:[#allocation5_spill] sm:$0xff] }
 0x1c0   : > { %v1552_v35 = vmul.f32 %v3450_v41, %v1291_v51  ;;  %v1553_v38 = vmul.f32 %v3450_v41, %v1292_v53 }
 0x1c2   : > { %v1584_v22 = vadd.f32 %v1552_v35, %v3435_v16  ;;  %v1585_v32 = vadd.f32 %v1553_v38, %v4253_v14 }
 0x1c4   : > { %v1616_v25 = vmax.f32 %v1584_v22, 0.0  ;;  %v1617_v63 = vmax.f32 %v1585_v32, 0.0  ;;  %v1189_v13 = vpop.permute.xlu1 %1188 }
 0x1c5   : > { %v1187_v42 = vpop.permute.xlu0 %1186  ;;  %v1220_v62 = vsel %vm1208_vm7, %v1189_v13, %v3716_v30  ;;  %v1268_v10 = vsel %vm1208_vm7, %v4254_v36, %v1189_v13 }
 0x1c6   : > { %1648 = vst [vmem:[%s3493_s13 + $0x90] sm:$0xff] %v1616_v25  ;;  %v1219_v26 = vsel %vm1208_vm7, %v3684_v45, %v1187_v42  ;;  %v1295_v16 = vsel %vm3441_vm8, %v4254_v36, %v1268_v10  ;;  %v1296_v54 = vsel %vm3609_vm9, %v4255_v29, %v1220_v62  ;;  %v4263_v62 = vld [vmem:[#allocation42_spill] sm:$0xff]  ;;  %v4265_v29 = vld [vmem:[#allocation41_spill] sm:$0xff] }
 0x1c7   : > { %1649 = vst [vmem:[%s3493_s13 + $0x98] sm:$0xff] %v1617_v63  ;;  %v1294_v30 = vsel %vm3609_vm9, %v4256_v11, %v1219_v26  ;;  %v1556_v0 = vmul.f32 %v3450_v41, %v1295_v16  ;;  %v1557_v31 = vmul.f32 %v3450_v41, %v1296_v54 }
 0x1c8   : > { %v1555_v45 = vmul.f32 %v3450_v41, %v1294_v30 }
 0x1c9   : > { %v1588_v56 = vadd.f32 %v1556_v0, %v3530_v50  ;;  %v1589_v2 = vadd.f32 %v1557_v31, %v3532_v60  ;;  %v4258_v60 = vld [vmem:[#allocation54_spill] sm:$0xff] }
 0x1ca   : > { %v1587_v37 = vadd.f32 %v1555_v45, %v3511_v6 }
 0x1cb   : > { %v1620_v23 = vmax.f32 %v1588_v56, 0.0  ;;  %v1621_v33 = vmax.f32 %v1589_v2, 0.0 }
 0x1cc   : > { %v1619_v39 = vmax.f32 %v1587_v37, 0.0  ;;  %v1195_v7 = vpop.permute.xlu1 %1194 }
 0x1cd   : > { %v1193_v21 = vpop.permute.xlu0 %1192  ;;  %1652 = vst [vmem:[%s3493_s13 + $0xb0] sm:$0xff] %v1620_v23 }
 0x1ce   : > { %v1221_v49 = vsel %vm1208_vm7, %v1193_v21, %v1195_v7  ;;  %v1269_v9 = vsel %vm1208_vm7, %v4257_v28, %v1193_v21  ;;  %1653 = vst [vmem:[%s3493_s13 + $0xb8] sm:$0xff] %v1621_v33 }
 0x1cf   : > { %v1297_v50 = vsel %vm3441_vm8, %v4257_v28, %v1269_v9  ;;  %v1298_v6 = vsel %vm3609_vm9, %v4258_v60, %v1221_v49  ;;  %1651 = vst [vmem:[%s3493_s13 + $0xa8] sm:$0xff] %v1619_v39 }
 0x1d0   : > { %v1558_v34 = vmul.f32 %v3450_v41, %v1297_v50  ;;  %v1559_v4 = vmul.f32 %v3450_v41, %v1298_v6 }
 0x1d2   : > { %v1590_v8 = vadd.f32 %v1558_v34, %v3543_v12  ;;  %v1591_v61 = vadd.f32 %v1559_v4, %v4259_v46 }
 0x1d4   : > { %v1622_v55 = vmax.f32 %v1590_v8, 0.0  ;;  %v1623_v5 = vmax.f32 %v1591_v61, 0.0  ;;  %v1201_v18 = vpop.permute.xlu1 %1200 }
 0x1d5   : > { %v1199_v19 = vpop.permute.xlu0 %1198  ;;  %v1223_v59 = vsel %vm1208_vm7, %v1201_v18, %v1203_v3  ;;  %v1271_v57 = vsel %vm1208_vm7, %v4260_v58, %v1201_v18 }
 0x1d6   : > { %1654 = vst [vmem:[%s3493_s13 + $0xc0] sm:$0xff] %v1622_v55  ;;  %v1222_v15 = vsel %vm1208_vm7, %v3736_v17, %v1199_v19  ;;  %v1301_v12 = vsel %vm3441_vm8, %v4260_v58, %v1271_v57  ;;  %v1302_v44 = vsel %vm3609_vm9, %v4261_v52, %v1223_v59 }
 0x1d7   : > { %1655 = vst [vmem:[%s3493_s13 + $0xc8] sm:$0xff] %v1623_v5  ;;  %v1300_v40 = vsel %vm3609_vm9, %v4262_v43, %v1222_v15  ;;  %v1562_v51 = vmul.f32 %v3450_v41, %v1301_v12  ;;  %v1563_v53 = vmul.f32 %v3450_v41, %v1302_v44 }
 0x1d8   : > { %v1561_v17 = vmul.f32 %v3450_v41, %v1300_v40 }
 0x1d9   : > { %v1594_v35 = vadd.f32 %v1562_v51, %v3618_v48  ;;  %v1595_v38 = vadd.f32 %v1563_v53, %v3620_v27  ;;  %v4264_v27 = vld [vmem:[#allocation12_spill] sm:$0xff] }
 0x1da   : > { %v1593_v22 = vadd.f32 %v1561_v17, %v3601_v20 }
 0x1db   : > { %v1626_v14 = vmax.f32 %v1594_v35, 0.0  ;;  %v1627_v32 = vmax.f32 %v1595_v38, 0.0 }
 0x1dc   : > { %v1625_v25 = vmax.f32 %v1593_v22, 0.0  ;;  %v1207_v63 = vpop.permute.xlu1 %1206 }
 0x1dd   : > { %v1205_v13 = vpop.permute.xlu0 %1204  ;;  %1658 = vst [vmem:[%s3493_s13 + $0xe0] sm:$0xff] %v1626_v14 }
 0x1de   : > { %v1224_v42 = vsel %vm1208_vm7, %v1205_v13, %v1207_v63  ;;  %v1272_v36 = vsel %vm1208_vm7, %v4263_v62, %v1205_v13  ;;  %1659 = vst [vmem:[%s3493_s13 + $0xe8] sm:$0xff] %v1627_v32 }
 0x1df   : > { %v1303_v48 = vsel %vm3441_vm8, %v4263_v62, %v1272_v36  ;;  %v1304_v20 = vsel %vm3609_vm9, %v4264_v27, %v1224_v42  ;;  %1657 = vst [vmem:[%s3493_s13 + $0xd8] sm:$0xff] %v1625_v25 }
 0x1e0   : > { %v1564_v10 = vmul.f32 %v3450_v41, %v1303_v48  ;;  %v1565_v26 = vmul.f32 %v3450_v41, %v1304_v20 }
 0x1e2   : > { %v1596_v16 = vadd.f32 %v1564_v10, %v3628_v47  ;;  %v1597_v54 = vadd.f32 %v1565_v26, %v4265_v29 }
 0x1e4   : > { %v1628_v11 = vmax.f32 %v1596_v16, 0.0  ;;  %v1629_v30 = vmax.f32 %v1597_v54, 0.0 }
 0x1e6   : > { %1660 = vst [vmem:[%s3493_s13 + $0xf0] sm:$0xff] %v1628_v11 }
 0x1e7   : > { %1661 = vst [vmem:[%s3493_s13 + $0xf8] sm:$0xff] %v1629_v30 }
 0x1e8 PF: > { %s16_s20 = sadd.s32 1, %s1965_s20   ;;  %s4266_s18 = smov %s1961_s19 }
 0x1e9   : > { %p13_p11 = scmp.ge.s32.totalorder %s16_s20, 4   ;;  %s4267_s19 = smov %s4269_s22 }
 0x1eb   :  { %15 = sbr.rel (!%p13_p11) target bundleno = 2 (0x2), region = 81 }
 0x1f0   :  { %1694 = vsyncpa [#allocation3], 1 }
 0x1f1   :  { %1696 = vsyncpa [#allocation3 + $0x1], 1 }

</bundles_post_ra>
